<compile_context>
chip_gen: v7x
topology: tpu7x:2x2x1
jax: 0.10.0
libtpu: 0.0.40
codegen_flags: <defaults>
</compile_context>

<pallas_src>
import functools

import jax
import jax.numpy as jnp
from jax.experimental import pallas as pl
from jax.experimental.pallas import tpu as pltpu

BN_EPS = 1e-5


@functools.lru_cache(maxsize=None)
def _vmem_limit_bytes():
    # ~85% of physical VMEM (v7x: 64 MiB -> ~54 MiB, v5e/v6e: 128 MiB -> capped at 110 MiB).
    try:
        cap = int(pltpu.get_tpu_info().vmem_capacity_bytes)
    except Exception:
        cap = 64 * 1024 * 1024
    return min(int(cap * 0.85), 110 * 1024 * 1024)


# ----------------------------- Pallas kernels --------------------------------

def _fused_conv_block_kernel(x_ref, b_ref, shift_ref, o_ref, *, stride, ksize, nb):
    """Fused conv + BN(eval) + ReLU + 2x2 maxpool for a block of `nb` images.

    x_ref:     (P*nb, Hmax, Wp*Cin)    bf16  row-parity planes (plane-major, image-minor)
    b_ref:     (2, k, Wp*Cin, Colsp)   bf16  banded conv weights (BN scale folded in), lane-padded
    shift_ref: (1, Colsp)              f32   BN/bias shift, tiled over pooled width, lane-padded
    o_ref:     (nb*OHp_pad, Colsp)     bf16  pooled output rows (image-major, row-minor)
    """
    m, _ = o_ref.shape
    ohp = m // nb                        # OHp padded to a sublane multiple
    kdim = x_ref.shape[-1]
    P = 2 * stride

    accs = [[None, None], [None, None]]  # [dh][dw] f32 accumulators
    # Iterate over distinct padded-row offsets q = dh*stride + ki: each lhs slice is loaded once
    # and reused for both dw matmuls and for every dh that shares this q (stride==1 overlap).
    for q in range(stride + ksize):
        plane, row0 = q % P, q // P
        lhs = x_ref[plane * nb:(plane + 1) * nb, row0:row0 + ohp, :].reshape(m, kdim)
        for dh in range(2):
            ki = q - dh * stride
            if 0 <= ki < ksize:
                for dw in range(2):
                    part = jnp.dot(lhs, b_ref[dw, ki, :, :],
                                   preferred_element_type=jnp.float32)
                    prev = accs[dh][dw]
                    accs[dh][dw] = part if prev is None else prev + part
    # TODO(synk): for large NB/OW tiles fold the max into a single f32 VMEM scratch per matmul to
    # keep vreg pressure flat; at these tile sizes four live accumulators fit comfortably.
    pooled = jnp.maximum(jnp.maximum(accs[0][0], accs[0][1]),
                         jnp.maximum(accs[1][0], accs[1][1]))
    # shift is constant over the pool window and ReLU is monotone -> +shift / relu after the max.
    o_ref[...] = jnp.maximum(pooled + shift_ref[...], 0.0).astype(o_ref.dtype)


def _linear_kernel(x_ref, w_ref, b_ref, o_ref):
    # TODO(synk): tile K with a reduction grid axis + f32 VMEM accumulator when the flattened
    # feature size is too large for a single resident block.
    o_ref[...] = jnp.dot(x_ref[...], w_ref[...],
                         preferred_element_type=jnp.float32) + b_ref[...]


# ----------------------------- wrappers ---------------------------------------

def _banded_weights(w_scaled, Wp, OWp, stride, ksize):
    """B[dw, ki, win*Cin + ci, wp*Cout + co] = w_scaled[co, ci, ki, kj]
    with kj = win - (2*stride*wp + dw*stride) when 0 <= kj < ksize, else 0."""
    win = jnp.arange(Wp)[:, None]                       # (Wp, 1)
    wp = jnp.arange(OWp)[None, :]                       # (1, OWp)
    per_dw = []
    for dw in range(2):
        kj = win - (2 * stride * wp + dw * stride)      # (Wp, OWp)
        valid = (kj >= 0) & (kj < ksize)
        kj_c = jnp.clip(kj, 0, ksize - 1)
        per_ki = []
        for ki in range(ksize):
            wk = jnp.transpose(w_scaled[:, :, ki, :], (2, 1, 0))   # (ksize, Cin, Cout) [kj,ci,co]
            g = wk[kj_c]                                           # (Wp, OWp, Cin, Cout)
            g = jnp.where(valid[:, :, None, None], g, 0.0)
            g = jnp.transpose(g, (0, 2, 1, 3)).reshape(Wp * w_scaled.shape[1],
                                                       OWp * w_scaled.shape[0])
            per_ki.append(g)
        per_dw.append(jnp.stack(per_ki, axis=0))
    return jnp.stack(per_dw, axis=0)                    # (2, ksize, Wp*Cin, OWp*Cout)


def conv_block_fused(x_nhwc, params):
    """conv(k,s,p) + BatchNorm(eval) + ReLU + Dropout(eval=id) + MaxPool2d(2,2); returns bf16 NHWC."""
    k, s, p = params['k'], params['s'], params['p']
    N, H, W, Cin = x_nhwc.shape
    w = params['w']                                     # (Cout, Cin, k, k), torch order
    Cout = w.shape[0]
    OH = (H + 2 * p - k) // s + 1
    OW = (W + 2 * p - k) // s + 1
    OHp, OWp = OH // 2, OW // 2                         # MaxPool2d(2,2) floors (matches PyTorch)
    assert OHp >= 1 and OWp >= 1
    P = 2 * s
    Hp, Wp = H + 2 * p, W + 2 * p
    kdim = Wp * Cin
    cols = OWp * Cout
    cols_pad = ((cols + 127) // 128) * 128              # lane-dense output stores
    ohp_pad = ((OHp + 7) // 8) * 8                      # sublane-aligned M rows per image
    row0_max = (s + k - 1) // P
    hmax = -(-Hp // P)
    hmax_pad = max(hmax, row0_max + ohp_pad)            # every row0:row0+ohp_pad slice in bounds
    assert hmax_pad >= row0_max + ohp_pad

    # Images per grid step: raise matmul M = NB*ohp_pad toward the MXU row count, but keep at
    # least two "parallel" grid steps so both v7x TensorCores get work.
    NB = max(1, min(N, 256 // ohp_pad))
    if N >= 2 and -(-N // NB) < 2:
        NB = (N + 1) // 2
    NBLK = -(-N // NB)
    N_pad = NBLK * NB

    # zero-pad and split rows into P=2*s parity planes; bf16 activation stream (1:1 rearrangement).
    # TODO(synk): fold this rearrangement into the previous layer's out_spec (extra HBM pass).
    xpad = jnp.pad(x_nhwc.astype(jnp.bfloat16),
                   ((0, N_pad - N), (p, p), (p, p), (0, 0)))
    planes = []
    for r in range(P):
        pr = xpad[:, r::P, :, :]                        # (N_pad, Hr, Wp, Cin)
        if pr.shape[1] < hmax_pad:
            pr = jnp.pad(pr, ((0, 0), (0, hmax_pad - pr.shape[1]), (0, 0), (0, 0)))
        planes.append(pr.reshape(N_pad, hmax_pad, kdim))
    xplanes = jnp.stack(planes, axis=1)                 # (N_pad, P, hmax_pad, kdim)
    xplanes = xplanes.reshape(NBLK, NB, P, hmax_pad, kdim)
    xplanes = jnp.transpose(xplanes, (0, 2, 1, 3, 4)).reshape(NBLK, P * NB, hmax_pad, kdim)

    # fold BN (eval) + conv bias: y = scale*conv + shift ; scale goes into the weights.
    scale = params['gamma'] / jnp.sqrt(params['var'] + BN_EPS)          # (Cout,)
    shift = params['beta'] + (params['b'] - params['mean']) * scale     # (Cout,)
    w_scaled = w * scale[:, None, None, None]
    bmat = _banded_weights(w_scaled, Wp, OWp, s, k)                     # (2, k, kdim, cols) f32
    bmat = jnp.pad(bmat, ((0, 0), (0, 0), (0, 0), (0, cols_pad - cols))).astype(jnp.bfloat16)
    shift_t = jnp.pad(jnp.tile(shift, OWp),
                      (0, cols_pad - cols)).reshape(1, cols_pad).astype(jnp.float32)

    # weights/shift fetched once (constant block index), activations/outputs once per image block.
    flops = NBLK * (4 * k) * 2 * (NB * ohp_pad) * kdim * cols_pad
    bytes_accessed = (xplanes.size * 2 + bmat.size * 2 + shift_t.size * 4
                      + NBLK * NB * ohp_pad * cols_pad * 2)

    def _call(single_buffer_consts):
        const_kw = dict(pipeline_mode=pl.Buffered(1)) if single_buffer_consts else {}
        return pl.pallas_call(
            functools.partial(_fused_conv_block_kernel, stride=s, ksize=k, nb=NB),
            out_shape=jax.ShapeDtypeStruct((NBLK, NB * ohp_pad, cols_pad), jnp.bfloat16),
            grid=(NBLK,),
            in_specs=[
                pl.BlockSpec((None, P * NB, hmax_pad, kdim), lambda i: (i, 0, 0, 0)),
                pl.BlockSpec((2, k, kdim, cols_pad), lambda i: (0, 0, 0, 0), **const_kw),
                pl.BlockSpec((1, cols_pad), lambda i: (0, 0), **const_kw),
            ],
            out_specs=pl.BlockSpec((None, NB * ohp_pad, cols_pad), lambda i: (i, 0, 0)),
            compiler_params=pltpu.CompilerParams(
                dimension_semantics=("parallel",),      # shard image blocks across TCs (v7x)
                vmem_limit_bytes=_vmem_limit_bytes()),
            cost_estimate=pl.CostEstimate(flops=flops, transcendentals=0,
                                          bytes_accessed=bytes_accessed),
        )(xplanes, bmat, shift_t)

    try:
        out = _call(True)       # single-buffer the constant-index weight/shift blocks
    except Exception:
        out = _call(False)      # fallback if pipeline_mode isn't supported by this JAX version

    out = out.reshape(N_pad, ohp_pad, cols_pad)[:N, :OHp, :cols]
    return out.reshape(N, OHp, OWp, Cout)               # NHWC, bf16


def linear(x_act, w, bias):
    """x @ w + bias with bf16 operands, f32 accumulation, lane-dense (128-padded) output."""
    N, F = x_act.shape
    out_dim = w.shape[1]
    out_pad = ((out_dim + 127) // 128) * 128
    Np = ((N + 7) // 8) * 8                             # sublane-aligned batch rows
    xp = jnp.pad(x_act.astype(jnp.bfloat16), ((0, Np - N), (0, 0)))
    wp = jnp.pad(w, ((0, 0), (0, out_pad - out_dim))).astype(jnp.bfloat16)
    bp = jnp.pad(bias, (0, out_pad - out_dim)).reshape(1, out_pad).astype(jnp.float32)
    out = pl.pallas_call(
        _linear_kernel,
        out_shape=jax.ShapeDtypeStruct((Np, out_pad), jnp.float32),
        grid=(1,),
        in_specs=[
            pl.BlockSpec((Np, F), lambda i: (0, 0)),
            pl.BlockSpec((F, out_pad), lambda i: (0, 0)),
            pl.BlockSpec((1, out_pad), lambda i: (0, 0)),
        ],
        out_specs=pl.BlockSpec((Np, out_pad), lambda i: (0, 0)),
        compiler_params=pltpu.CompilerParams(vmem_limit_bytes=_vmem_limit_bytes()),
    )(xp, wp, bp)
    return out[:N, :out_dim]


# ----------------------------- params & forward --------------------------------

def init_params(key, input_channels, output_channels, input_dict, input_size):
    conv_params = []
    current_size = input_size
    in_ch = input_channels
    for layer in range(len(input_dict['size'])):
        out_ch = input_dict['size'][layer]
        k = input_dict['kernel_size'][layer]
        s = input_dict['stride'][layer]
        p = input_dict['padding'][layer]
        key, kw_, kb_, kg_, kbe_, km_, kv_ = jax.random.split(key, 7)
        conv_params.append(dict(
            w=0.1 * jax.random.normal(kw_, (out_ch, in_ch, k, k), jnp.float32),  # torch order
            b=0.1 * jax.random.normal(kb_, (out_ch,), jnp.float32),
            gamma=1.0 + 0.1 * jax.random.normal(kg_, (out_ch,), jnp.float32),
            beta=0.1 * jax.random.normal(kbe_, (out_ch,), jnp.float32),
            mean=0.1 * jax.random.normal(km_, (out_ch,), jnp.float32),
            var=1.0 + 0.1 * jax.random.uniform(kv_, (out_ch,), jnp.float32),
            k=k, s=s, p=p,
        ))
        current_size = (current_size + 2 * p - k) // s + 1
        current_size = current_size // 2
        in_ch = out_ch
    flat = current_size * current_size * input_dict['size'][-1]
    key, k1, k2 = jax.random.split(key, 3)
    fc_w = 0.05 * jax.random.normal(k1, (flat, output_channels), jnp.float32)  # rows in CHW order
    fc_b = 0.05 * jax.random.normal(k2, (output_channels,), jnp.float32)
    return conv_params, fc_w, fc_b


def forward(x_nchw, conv_params, fc_w, fc_b):
    x = jnp.transpose(x_nchw, (0, 2, 3, 1))             # NCHW -> NHWC once, at the input
    N = x.shape[0]
    for p in conv_params:
        x = conv_block_fused(x, p)                      # conv+bn+relu+(dropout id)+maxpool, bf16
    # FC accepts the NHWC flatten directly: permute fc_w's rows (stored in torch CHW order) once,
    # instead of relaying out the activation tensor every forward pass.
    Hc, Wc, C = x.shape[1], x.shape[2], x.shape[3]
    chw_index = jnp.transpose(jnp.arange(C * Hc * Wc).reshape(C, Hc, Wc), (1, 2, 0)).reshape(-1)
    fc_w_hwc = fc_w[chw_index]
    xf = x.reshape(N, -1)                               # NHWC flatten (bf16, no relayout)
    return linear(xf, fc_w_hwc, fc_b)


# ----------------------------- pure-JAX reference -----------------------------

def forward_ref(x_nchw, conv_params, fc_w, fc_b):
    x = jnp.transpose(x_nchw, (0, 2, 3, 1))
    for p in conv_params:
        w_hwio = jnp.transpose(p['w'], (2, 3, 1, 0))
        y = jax.lax.conv_general_dilated(
            x, w_hwio, window_strides=(p['s'], p['s']),
            padding=[(p['p'], p['p'])] * 2,
            dimension_numbers=('NHWC', 'HWIO', 'NHWC'),
            precision=jax.lax.Precision.HIGHEST)
        y = y + p['b']
        scale = p['gamma'] / jnp.sqrt(p['var'] + BN_EPS)
        y = (y - p['mean']) * scale + p['beta']
        y = jnp.maximum(y, 0.0)
        Nb, Hy, Wy, C = y.shape
        y = y[:, :Hy // 2 * 2, :Wy // 2 * 2, :]          # floor, matching MaxPool2d(2,2)
        x = y.reshape(Nb, Hy // 2, 2, Wy // 2, 2, C).max(axis=(2, 4))
    xf = jnp.transpose(x, (0, 3, 1, 2)).reshape(x.shape[0], -1)   # torch CHW flatten
    return xf @ fc_w + fc_b


# ----------------------------- main --------------------------------------------

if __name__ == "__main__":
    key = jax.random.PRNGKey(0)
    input_channels = 4
    output_channels = 10
    input_size = 16
    input_dict = {
        'size': [8, 16],
        'kernel_size': [3, 3],
        'stride': [1, 1],
        'padding': [1, 1],
        'dropout': [0.5, 0.5],
    }

    key, kx, kp = jax.random.split(key, 3)
    x = jax.random.normal(kx, (4, input_channels, input_size, input_size), jnp.float32)
    conv_params, fc_w, fc_b = init_params(kp, input_channels, output_channels,
                                          input_dict, input_size)

    out = forward(x, conv_params, fc_w, fc_b)
    out = jax.block_until_ready(out)

    ref = forward_ref(x, conv_params, fc_w, fc_b)
    assert out.shape == (4, output_channels), out.shape
    assert bool(jnp.all(jnp.isfinite(out)))
    assert bool(jnp.allclose(out, ref, rtol=5e-2, atol=5e-2)), (out, ref)

    print("KERNEL_OK")
</pallas_src>

<mosaic_0001>
module attributes {stable_mosaic.version = 11 : i64} {
  func.func @_fused_conv_block_kernel(%arg0: i32, %arg1: memref<1x4x9x72xbf16, #tpu.memory_space<vmem>>, %arg2: memref<2x3x72x128xbf16, #tpu.memory_space<vmem>>, %arg3: memref<1x128xf32, #tpu.memory_space<vmem>>, %arg4: memref<1x16x128xbf16, #tpu.memory_space<vmem>>) attributes {dimension_semantics = [#tpu.dimension_semantics<parallel>], iteration_bounds = array<i64: 2>, scalar_prefetch = 0 : i64, scratch_operands = 0 : i64, tpu.core_type = #tpu.core_type<tc>, window_params = [{transform_indices = @transform_0, window_bounds = array<i64: 1, 4, 9, 72>}, {pipeline_mode = #tpu.pipeline_mode<synchronous>, transform_indices = @transform_1, window_bounds = array<i64: 2, 3, 72, 128>}, {pipeline_mode = #tpu.pipeline_mode<synchronous>, transform_indices = @transform_2, window_bounds = array<i64: 1, 128>}, {transform_indices = @transform_3, window_bounds = array<i64: 1, 16, 128>}]} {
    %c0 = arith.constant 0 : index
    %c0_0 = arith.constant 0 : index
    %c0_1 = arith.constant 0 : index
    %c0_2 = arith.constant 0 : index
    %0 = vector.load %arg1[%c0, %c0_0, %c0_1, %c0_2] : memref<1x4x9x72xbf16, #tpu.memory_space<vmem>>, vector<1x2x8x72xbf16>
    %1 = vector.shape_cast %0 : vector<1x2x8x72xbf16> to vector<2x8x72xbf16>
    %2 = vector.shape_cast %1 : vector<2x8x72xbf16> to vector<16x72xbf16>
    %c0_3 = arith.constant 0 : index
    %c0_4 = arith.constant 0 : index
    %c0_5 = arith.constant 0 : index
    %c0_6 = arith.constant 0 : index
    %3 = vector.load %arg2[%c0_3, %c0_4, %c0_5, %c0_6] : memref<2x3x72x128xbf16, #tpu.memory_space<vmem>>, vector<1x1x72x128xbf16>
    %4 = vector.shape_cast %3 : vector<1x1x72x128xbf16> to vector<72x128xbf16>
    %cst = arith.constant dense<0.000000e+00> : vector<16x128xf32>
    %5 = tpu.matmul %2, %4, %cst {dimension_numbers = #tpu.dot_dimension_numbers<[1], [0], [0], [1], [0, 0, 1, 1], [], []>} : vector<16x72xbf16>, vector<72x128xbf16>, vector<16x128xf32> -> vector<16x128xf32>
    %c1 = arith.constant 1 : index
    %c0_7 = arith.constant 0 : index
    %c0_8 = arith.constant 0 : index
    %c0_9 = arith.constant 0 : index
    %6 = vector.load %arg2[%c1, %c0_7, %c0_8, %c0_9] : memref<2x3x72x128xbf16, #tpu.memory_space<vmem>>, vector<1x1x72x128xbf16>
    %7 = vector.shape_cast %6 : vector<1x1x72x128xbf16> to vector<72x128xbf16>
    %cst_10 = arith.constant dense<0.000000e+00> : vector<16x128xf32>
    %8 = tpu.matmul %2, %7, %cst_10 {dimension_numbers = #tpu.dot_dimension_numbers<[1], [0], [0], [1], [0, 0, 1, 1], [], []>} : vector<16x72xbf16>, vector<72x128xbf16>, vector<16x128xf32> -> vector<16x128xf32>
    %c0_11 = arith.constant 0 : index
    %c2 = arith.constant 2 : index
    %c0_12 = arith.constant 0 : index
    %c0_13 = arith.constant 0 : index
    %9 = vector.load %arg1[%c0_11, %c2, %c0_12, %c0_13] : memref<1x4x9x72xbf16, #tpu.memory_space<vmem>>, vector<1x2x8x72xbf16>
    %10 = vector.shape_cast %9 : vector<1x2x8x72xbf16> to vector<2x8x72xbf16>
    %11 = vector.shape_cast %10 : vector<2x8x72xbf16> to vector<16x72xbf16>
    %c0_14 = arith.constant 0 : index
    %c1_15 = arith.constant 1 : index
    %c0_16 = arith.constant 0 : index
    %c0_17 = arith.constant 0 : index
    %12 = vector.load %arg2[%c0_14, %c1_15, %c0_16, %c0_17] : memref<2x3x72x128xbf16, #tpu.memory_space<vmem>>, vector<1x1x72x128xbf16>
    %13 = vector.shape_cast %12 : vector<1x1x72x128xbf16> to vector<72x128xbf16>
    %cst_18 = arith.constant dense<0.000000e+00> : vector<16x128xf32>
    %14 = tpu.matmul %11, %13, %cst_18 {dimension_numbers = #tpu.dot_dimension_numbers<[1], [0], [0], [1], [0, 0, 1, 1], [], []>} : vector<16x72xbf16>, vector<72x128xbf16>, vector<16x128xf32> -> vector<16x128xf32>
    %15 = arith.addf %5, %14 : vector<16x128xf32>
    %c1_19 = arith.constant 1 : index
    %c1_20 = arith.constant 1 : index
    %c0_21 = arith.constant 0 : index
    %c0_22 = arith.constant 0 : index
    %16 = vector.load %arg2[%c1_19, %c1_20, %c0_21, %c0_22] : memref<2x3x72x128xbf16, #tpu.memory_space<vmem>>, vector<1x1x72x128xbf16>
    %17 = vector.shape_cast %16 : vector<1x1x72x128xbf16> to vector<72x128xbf16>
    %cst_23 = arith.constant dense<0.000000e+00> : vector<16x128xf32>
    %18 = tpu.matmul %11, %17, %cst_23 {dimension_numbers = #tpu.dot_dimension_numbers<[1], [0], [0], [1], [0, 0, 1, 1], [], []>} : vector<16x72xbf16>, vector<72x128xbf16>, vector<16x128xf32> -> vector<16x128xf32>
    %19 = arith.addf %8, %18 : vector<16x128xf32>
    %c0_24 = arith.constant 0 : index
    %c0_25 = arith.constant 0 : index
    %c0_26 = arith.constant 0 : index
    %c0_27 = arith.constant 0 : index
    %20 = vector.load %arg2[%c0_24, %c0_25, %c0_26, %c0_27] : memref<2x3x72x128xbf16, #tpu.memory_space<vmem>>, vector<1x1x72x128xbf16>
    %21 = vector.shape_cast %20 : vector<1x1x72x128xbf16> to vector<72x128xbf16>
    %cst_28 = arith.constant dense<0.000000e+00> : vector<16x128xf32>
    %22 = tpu.matmul %11, %21, %cst_28 {dimension_numbers = #tpu.dot_dimension_numbers<[1], [0], [0], [1], [0, 0, 1, 1], [], []>} : vector<16x72xbf16>, vector<72x128xbf16>, vector<16x128xf32> -> vector<16x128xf32>
    %c1_29 = arith.constant 1 : index
    %c0_30 = arith.constant 0 : index
    %c0_31 = arith.constant 0 : index
    %c0_32 = arith.constant 0 : index
    %23 = vector.load %arg2[%c1_29, %c0_30, %c0_31, %c0_32] : memref<2x3x72x128xbf16, #tpu.memory_space<vmem>>, vector<1x1x72x128xbf16>
    %24 = vector.shape_cast %23 : vector<1x1x72x128xbf16> to vector<72x128xbf16>
    %cst_33 = arith.constant dense<0.000000e+00> : vector<16x128xf32>
    %25 = tpu.matmul %11, %24, %cst_33 {dimension_numbers = #tpu.dot_dimension_numbers<[1], [0], [0], [1], [0, 0, 1, 1], [], []>} : vector<16x72xbf16>, vector<72x128xbf16>, vector<16x128xf32> -> vector<16x128xf32>
    %c0_34 = arith.constant 0 : index
    %c0_35 = arith.constant 0 : index
    %c1_36 = arith.constant 1 : index
    %c0_37 = arith.constant 0 : index
    %26 = vector.load %arg1[%c0_34, %c0_35, %c1_36, %c0_37] : memref<1x4x9x72xbf16, #tpu.memory_space<vmem>>, vector<1x2x8x72xbf16>
    %27 = vector.shape_cast %26 : vector<1x2x8x72xbf16> to vector<2x8x72xbf16>
    %28 = vector.shape_cast %27 : vector<2x8x72xbf16> to vector<16x72xbf16>
    %c0_38 = arith.constant 0 : index
    %c2_39 = arith.constant 2 : index
    %c0_40 = arith.constant 0 : index
    %c0_41 = arith.constant 0 : index
    %29 = vector.load %arg2[%c0_38, %c2_39, %c0_40, %c0_41] : memref<2x3x72x128xbf16, #tpu.memory_space<vmem>>, vector<1x1x72x128xbf16>
    %30 = vector.shape_cast %29 : vector<1x1x72x128xbf16> to vector<72x128xbf16>
    %cst_42 = arith.constant dense<0.000000e+00> : vector<16x128xf32>
    %31 = tpu.matmul %28, %30, %cst_42 {dimension_numbers = #tpu.dot_dimension_numbers<[1], [0], [0], [1], [0, 0, 1, 1], [], []>} : vector<16x72xbf16>, vector<72x128xbf16>, vector<16x128xf32> -> vector<16x128xf32>
    %32 = arith.addf %15, %31 : vector<16x128xf32>
    %c1_43 = arith.constant 1 : index
    %c2_44 = arith.constant 2 : index
    %c0_45 = arith.constant 0 : index
    %c0_46 = arith.constant 0 : index
    %33 = vector.load %arg2[%c1_43, %c2_44, %c0_45, %c0_46] : memref<2x3x72x128xbf16, #tpu.memory_space<vmem>>, vector<1x1x72x128xbf16>
    %34 = vector.shape_cast %33 : vector<1x1x72x128xbf16> to vector<72x128xbf16>
    %cst_47 = arith.constant dense<0.000000e+00> : vector<16x128xf32>
    %35 = tpu.matmul %28, %34, %cst_47 {dimension_numbers = #tpu.dot_dimension_numbers<[1], [0], [0], [1], [0, 0, 1, 1], [], []>} : vector<16x72xbf16>, vector<72x128xbf16>, vector<16x128xf32> -> vector<16x128xf32>
    %36 = arith.addf %19, %35 : vector<16x128xf32>
    %c0_48 = arith.constant 0 : index
    %c1_49 = arith.constant 1 : index
    %c0_50 = arith.constant 0 : index
    %c0_51 = arith.constant 0 : index
    %37 = vector.load %arg2[%c0_48, %c1_49, %c0_50, %c0_51] : memref<2x3x72x128xbf16, #tpu.memory_space<vmem>>, vector<1x1x72x128xbf16>
    %38 = vector.shape_cast %37 : vector<1x1x72x128xbf16> to vector<72x128xbf16>
    %cst_52 = arith.constant dense<0.000000e+00> : vector<16x128xf32>
    %39 = tpu.matmul %28, %38, %cst_52 {dimension_numbers = #tpu.dot_dimension_numbers<[1], [0], [0], [1], [0, 0, 1, 1], [], []>} : vector<16x72xbf16>, vector<72x128xbf16>, vector<16x128xf32> -> vector<16x128xf32>
    %40 = arith.addf %22, %39 : vector<16x128xf32>
    %c1_53 = arith.constant 1 : index
    %c1_54 = arith.constant 1 : index
    %c0_55 = arith.constant 0 : index
    %c0_56 = arith.constant 0 : index
    %41 = vector.load %arg2[%c1_53, %c1_54, %c0_55, %c0_56] : memref<2x3x72x128xbf16, #tpu.memory_space<vmem>>, vector<1x1x72x128xbf16>
    %42 = vector.shape_cast %41 : vector<1x1x72x128xbf16> to vector<72x128xbf16>
    %cst_57 = arith.constant dense<0.000000e+00> : vector<16x128xf32>
    %43 = tpu.matmul %28, %42, %cst_57 {dimension_numbers = #tpu.dot_dimension_numbers<[1], [0], [0], [1], [0, 0, 1, 1], [], []>} : vector<16x72xbf16>, vector<72x128xbf16>, vector<16x128xf32> -> vector<16x128xf32>
    %44 = arith.addf %25, %43 : vector<16x128xf32>
    %c0_58 = arith.constant 0 : index
    %c2_59 = arith.constant 2 : index
    %c1_60 = arith.constant 1 : index
    %c0_61 = arith.constant 0 : index
    %45 = vector.load %arg1[%c0_58, %c2_59, %c1_60, %c0_61] : memref<1x4x9x72xbf16, #tpu.memory_space<vmem>>, vector<1x2x8x72xbf16>
    %46 = vector.shape_cast %45 : vector<1x2x8x72xbf16> to vector<2x8x72xbf16>
    %47 = vector.shape_cast %46 : vector<2x8x72xbf16> to vector<16x72xbf16>
    %c0_62 = arith.constant 0 : index
    %c2_63 = arith.constant 2 : index
    %c0_64 = arith.constant 0 : index
    %c0_65 = arith.constant 0 : index
    %48 = vector.load %arg2[%c0_62, %c2_63, %c0_64, %c0_65] : memref<2x3x72x128xbf16, #tpu.memory_space<vmem>>, vector<1x1x72x128xbf16>
    %49 = vector.shape_cast %48 : vector<1x1x72x128xbf16> to vector<72x128xbf16>
    %cst_66 = arith.constant dense<0.000000e+00> : vector<16x128xf32>
    %50 = tpu.matmul %47, %49, %cst_66 {dimension_numbers = #tpu.dot_dimension_numbers<[1], [0], [0], [1], [0, 0, 1, 1], [], []>} : vector<16x72xbf16>, vector<72x128xbf16>, vector<16x128xf32> -> vector<16x128xf32>
    %51 = arith.addf %40, %50 : vector<16x128xf32>
    %c1_67 = arith.constant 1 : index
    %c2_68 = arith.constant 2 : index
    %c0_69 = arith.constant 0 : index
    %c0_70 = arith.constant 0 : index
    %52 = vector.load %arg2[%c1_67, %c2_68, %c0_69, %c0_70] : memref<2x3x72x128xbf16, #tpu.memory_space<vmem>>, vector<1x1x72x128xbf16>
    %53 = vector.shape_cast %52 : vector<1x1x72x128xbf16> to vector<72x128xbf16>
    %cst_71 = arith.constant dense<0.000000e+00> : vector<16x128xf32>
    %54 = tpu.matmul %47, %53, %cst_71 {dimension_numbers = #tpu.dot_dimension_numbers<[1], [0], [0], [1], [0, 0, 1, 1], [], []>} : vector<16x72xbf16>, vector<72x128xbf16>, vector<16x128xf32> -> vector<16x128xf32>
    %55 = arith.addf %44, %54 : vector<16x128xf32>
    %56 = arith.maximumf %32, %36 : vector<16x128xf32>
    %57 = arith.maximumf %51, %55 : vector<16x128xf32>
    %58 = arith.maximumf %56, %57 : vector<16x128xf32>
    %c0_72 = arith.constant 0 : index
    %c0_73 = arith.constant 0 : index
    %59 = vector.load %arg3[%c0_72, %c0_73] : memref<1x128xf32, #tpu.memory_space<vmem>>, vector<1x128xf32>
    %60 = vector.broadcast %59 : vector<1x128xf32> to vector<16x128xf32>
    %61 = arith.addf %58, %60 : vector<16x128xf32>
    %cst_74 = arith.constant 0.000000e+00 : f32
    %62 = vector.broadcast %cst_74 : f32 to vector<16x128xf32>
    %63 = arith.maximumf %61, %62 : vector<16x128xf32>
    %64 = arith.truncf %63 : vector<16x128xf32> to vector<16x128xbf16>
    %c0_75 = arith.constant 0 : index
    %c0_76 = arith.constant 0 : index
    %c0_77 = arith.constant 0 : index
    %65 = vector.load %arg4[%c0_75, %c0_76, %c0_77] : memref<1x16x128xbf16, #tpu.memory_space<vmem>>, vector<1x16x128xbf16>
    %66 = vector.shape_cast %65 : vector<1x16x128xbf16> to vector<16x128xbf16>
    %67 = vector.shape_cast %64 : vector<16x128xbf16> to vector<1x16x128xbf16>
    tpu.vector_store %arg4[%c0_75, %c0_76, %c0_77], %67 {strides = array<i32>} : memref<1x16x128xbf16, #tpu.memory_space<vmem>>, vector<1x16x128xbf16>,
    return
  }
  func.func @transform_0(%arg0: i32) -> (i32, i32, i32, i32) {
    %c0_i32 = arith.constant 0 : i32
    %c0_i32_0 = arith.constant 0 : i32
    %c0_i32_1 = arith.constant 0 : i32
    %c0_i32_2 = arith.constant 0 : i32
    return %arg0, %c0_i32, %c0_i32_0, %c0_i32_1 : i32, i32, i32, i32
  }
  func.func @transform_1(%arg0: i32) -> (i32, i32, i32, i32) {
    %c0_i32 = arith.constant 0 : i32
    %c0_i32_0 = arith.constant 0 : i32
    %c0_i32_1 = arith.constant 0 : i32
    %c0_i32_2 = arith.constant 0 : i32
    %c0_i32_3 = arith.constant 0 : i32
    return %c0_i32, %c0_i32_0, %c0_i32_1, %c0_i32_2 : i32, i32, i32, i32
  }
  func.func @transform_2(%arg0: i32) -> (i32, i32) {
    %c0_i32 = arith.constant 0 : i32
    %c0_i32_0 = arith.constant 0 : i32
    %c0_i32_1 = arith.constant 0 : i32
    return %c0_i32, %c0_i32_0 : i32, i32
  }
  func.func @transform_3(%arg0: i32) -> (i32, i32, i32) {
    %c0_i32 = arith.constant 0 : i32
    %c0_i32_0 = arith.constant 0 : i32
    %c0_i32_1 = arith.constant 0 : i32
    return %arg0, %c0_i32, %c0_i32_0 : i32, i32, i32
  }
}

module attributes {stable_mosaic.version = 11 : i64} {
  func.func @_fused_conv_block_kernel(%arg0: i32, %arg1: memref<1x4x9x72xbf16, #tpu.memory_space<vmem>>, %arg2: memref<2x3x72x128xbf16, #tpu.memory_space<vmem>>, %arg3: memref<1x128xf32, #tpu.memory_space<vmem>>, %arg4: memref<1x16x128xbf16, #tpu.memory_space<vmem>>) attributes {dimension_semantics = [#tpu.dimension_semantics<parallel>], iteration_bounds = array<i64: 2>, scalar_prefetch = 0 : i64, scratch_operands = 0 : i64, tpu.core_type = #tpu.core_type<tc>, window_params = [{transform_indices = @transform_0, window_bounds = array<i64: 1, 4, 9, 72>}, {pipeline_mode = #tpu.pipeline_mode<synchronous>, transform_indices = @transform_1, window_bounds = array<i64: 2, 3, 72, 128>}, {pipeline_mode = #tpu.pipeline_mode<synchronous>, transform_indices = @transform_2, window_bounds = array<i64: 1, 128>}, {transform_indices = @transform_3, window_bounds = array<i64: 1, 16, 128>}]} {
    %c0 = arith.constant 0 : index
    %c0_0 = arith.constant 0 : index
    %c0_1 = arith.constant 0 : index
    %c0_2 = arith.constant 0 : index
    %0 = vector.load %arg1[%c0, %c0_0, %c0_1, %c0_2] : memref<1x4x9x72xbf16, #tpu.memory_space<vmem>>, vector<1x2x8x72xbf16>
    %1 = vector.shape_cast %0 : vector<1x2x8x72xbf16> to vector<2x8x72xbf16>
    %2 = vector.shape_cast %1 : vector<2x8x72xbf16> to vector<16x72xbf16>
    %c0_3 = arith.constant 0 : index
    %c0_4 = arith.constant 0 : index
    %c0_5 = arith.constant 0 : index
    %c0_6 = arith.constant 0 : index
    %3 = vector.load %arg2[%c0_3, %c0_4, %c0_5, %c0_6] : memref<2x3x72x128xbf16, #tpu.memory_space<vmem>>, vector<1x1x72x128xbf16>
    %4 = vector.shape_cast %3 : vector<1x1x72x128xbf16> to vector<72x128xbf16>
    %cst = arith.constant dense<0.000000e+00> : vector<16x128xf32>
    %5 = tpu.matmul %2, %4, %cst {dimension_numbers = #tpu.dot_dimension_numbers<[1], [0], [0], [1], [0, 0, 1, 1], [], []>} : vector<16x72xbf16>, vector<72x128xbf16>, vector<16x128xf32> -> vector<16x128xf32>
    %c1 = arith.constant 1 : index
    %c0_7 = arith.constant 0 : index
    %c0_8 = arith.constant 0 : index
    %c0_9 = arith.constant 0 : index
    %6 = vector.load %arg2[%c1, %c0_7, %c0_8, %c0_9] : memref<2x3x72x128xbf16, #tpu.memory_space<vmem>>, vector<1x1x72x128xbf16>
    %7 = vector.shape_cast %6 : vector<1x1x72x128xbf16> to vector<72x128xbf16>
    %cst_10 = arith.constant dense<0.000000e+00> : vector<16x128xf32>
    %8 = tpu.matmul %2, %7, %cst_10 {dimension_numbers = #tpu.dot_dimension_numbers<[1], [0], [0], [1], [0, 0, 1, 1], [], []>} : vector<16x72xbf16>, vector<72x128xbf16>, vector<16x128xf32> -> vector<16x128xf32>
    %c0_11 = arith.constant 0 : index
    %c2 = arith.constant 2 : index
    %c0_12 = arith.constant 0 : index
    %c0_13 = arith.constant 0 : index
    %9 = vector.load %arg1[%c0_11, %c2, %c0_12, %c0_13] : memref<1x4x9x72xbf16, #tpu.memory_space<vmem>>, vector<1x2x8x72xbf16>
    %10 = vector.shape_cast %9 : vector<1x2x8x72xbf16> to vector<2x8x72xbf16>
    %11 = vector.shape_cast %10 : vector<2x8x72xbf16> to vector<16x72xbf16>
    %c0_14 = arith.constant 0 : index
    %c1_15 = arith.constant 1 : index
    %c0_16 = arith.constant 0 : index
    %c0_17 = arith.constant 0 : index
    %12 = vector.load %arg2[%c0_14, %c1_15, %c0_16, %c0_17] : memref<2x3x72x128xbf16, #tpu.memory_space<vmem>>, vector<1x1x72x128xbf16>
    %13 = vector.shape_cast %12 : vector<1x1x72x128xbf16> to vector<72x128xbf16>
    %cst_18 = arith.constant dense<0.000000e+00> : vector<16x128xf32>
    %14 = tpu.matmul %11, %13, %cst_18 {dimension_numbers = #tpu.dot_dimension_numbers<[1], [0], [0], [1], [0, 0, 1, 1], [], []>} : vector<16x72xbf16>, vector<72x128xbf16>, vector<16x128xf32> -> vector<16x128xf32>
    %15 = arith.addf %5, %14 : vector<16x128xf32>
    %c1_19 = arith.constant 1 : index
    %c1_20 = arith.constant 1 : index
    %c0_21 = arith.constant 0 : index
    %c0_22 = arith.constant 0 : index
    %16 = vector.load %arg2[%c1_19, %c1_20, %c0_21, %c0_22] : memref<2x3x72x128xbf16, #tpu.memory_space<vmem>>, vector<1x1x72x128xbf16>
    %17 = vector.shape_cast %16 : vector<1x1x72x128xbf16> to vector<72x128xbf16>
    %cst_23 = arith.constant dense<0.000000e+00> : vector<16x128xf32>
    %18 = tpu.matmul %11, %17, %cst_23 {dimension_numbers = #tpu.dot_dimension_numbers<[1], [0], [0], [1], [0, 0, 1, 1], [], []>} : vector<16x72xbf16>, vector<72x128xbf16>, vector<16x128xf32> -> vector<16x128xf32>
    %19 = arith.addf %8, %18 : vector<16x128xf32>
    %c0_24 = arith.constant 0 : index
    %c0_25 = arith.constant 0 : index
    %c0_26 = arith.constant 0 : index
    %c0_27 = arith.constant 0 : index
    %20 = vector.load %arg2[%c0_24, %c0_25, %c0_26, %c0_27] : memref<2x3x72x128xbf16, #tpu.memory_space<vmem>>, vector<1x1x72x128xbf16>
    %21 = vector.shape_cast %20 : vector<1x1x72x128xbf16> to vector<72x128xbf16>
    %cst_28 = arith.constant dense<0.000000e+00> : vector<16x128xf32>
    %22 = tpu.matmul %11, %21, %cst_28 {dimension_numbers = #tpu.dot_dimension_numbers<[1], [0], [0], [1], [0, 0, 1, 1], [], []>} : vector<16x72xbf16>, vector<72x128xbf16>, vector<16x128xf32> -> vector<16x128xf32>
    %c1_29 = arith.constant 1 : index
    %c0_30 = arith.constant 0 : index
    %c0_31 = arith.constant 0 : index
    %c0_32 = arith.constant 0 : index
    %23 = vector.load %arg2[%c1_29, %c0_30, %c0_31, %c0_32] : memref<2x3x72x128xbf16, #tpu.memory_space<vmem>>, vector<1x1x72x128xbf16>
    %24 = vector.shape_cast %23 : vector<1x1x72x128xbf16> to vector<72x128xbf16>
    %cst_33 = arith.constant dense<0.000000e+00> : vector<16x128xf32>
    %25 = tpu.matmul %11, %24, %cst_33 {dimension_numbers = #tpu.dot_dimension_numbers<[1], [0], [0], [1], [0, 0, 1, 1], [], []>} : vector<16x72xbf16>, vector<72x128xbf16>, vector<16x128xf32> -> vector<16x128xf32>
    %c0_34 = arith.constant 0 : index
    %c0_35 = arith.constant 0 : index
    %c1_36 = arith.constant 1 : index
    %c0_37 = arith.constant 0 : index
    %26 = vector.load %arg1[%c0_34, %c0_35, %c1_36, %c0_37] : memref<1x4x9x72xbf16, #tpu.memory_space<vmem>>, vector<1x2x8x72xbf16>
    %27 = vector.shape_cast %26 : vector<1x2x8x72xbf16> to vector<2x8x72xbf16>
    %28 = vector.shape_cast %27 : vector<2x8x72xbf16> to vector<16x72xbf16>
    %c0_38 = arith.constant 0 : index
    %c2_39 = arith.constant 2 : index
    %c0_40 = arith.constant 0 : index
    %c0_41 = arith.constant 0 : index
    %29 = vector.load %arg2[%c0_38, %c2_39, %c0_40, %c0_41] : memref<2x3x72x128xbf16, #tpu.memory_space<vmem>>, vector<1x1x72x128xbf16>
    %30 = vector.shape_cast %29 : vector<1x1x72x128xbf16> to vector<72x128xbf16>
    %cst_42 = arith.constant dense<0.000000e+00> : vector<16x128xf32>
    %31 = tpu.matmul %28, %30, %cst_42 {dimension_numbers = #tpu.dot_dimension_numbers<[1], [0], [0], [1], [0, 0, 1, 1], [], []>} : vector<16x72xbf16>, vector<72x128xbf16>, vector<16x128xf32> -> vector<16x128xf32>
    %32 = arith.addf %15, %31 : vector<16x128xf32>
    %c1_43 = arith.constant 1 : index
    %c2_44 = arith.constant 2 : index
    %c0_45 = arith.constant 0 : index
    %c0_46 = arith.constant 0 : index
    %33 = vector.load %arg2[%c1_43, %c2_44, %c0_45, %c0_46] : memref<2x3x72x128xbf16, #tpu.memory_space<vmem>>, vector<1x1x72x128xbf16>
    %34 = vector.shape_cast %33 : vector<1x1x72x128xbf16> to vector<72x128xbf16>
    %cst_47 = arith.constant dense<0.000000e+00> : vector<16x128xf32>
    %35 = tpu.matmul %28, %34, %cst_47 {dimension_numbers = #tpu.dot_dimension_numbers<[1], [0], [0], [1], [0, 0, 1, 1], [], []>} : vector<16x72xbf16>, vector<72x128xbf16>, vector<16x128xf32> -> vector<16x128xf32>
    %36 = arith.addf %19, %35 : vector<16x128xf32>
    %c0_48 = arith.constant 0 : index
    %c1_49 = arith.constant 1 : index
    %c0_50 = arith.constant 0 : index
    %c0_51 = arith.constant 0 : index
    %37 = vector.load %arg2[%c0_48, %c1_49, %c0_50, %c0_51] : memref<2x3x72x128xbf16, #tpu.memory_space<vmem>>, vector<1x1x72x128xbf16>
    %38 = vector.shape_cast %37 : vector<1x1x72x128xbf16> to vector<72x128xbf16>
    %cst_52 = arith.constant dense<0.000000e+00> : vector<16x128xf32>
    %39 = tpu.matmul %28, %38, %cst_52 {dimension_numbers = #tpu.dot_dimension_numbers<[1], [0], [0], [1], [0, 0, 1, 1], [], []>} : vector<16x72xbf16>, vector<72x128xbf16>, vector<16x128xf32> -> vector<16x128xf32>
    %40 = arith.addf %22, %39 : vector<16x128xf32>
    %c1_53 = arith.constant 1 : index
    %c1_54 = arith.constant 1 : index
    %c0_55 = arith.constant 0 : index
    %c0_56 = arith.constant 0 : index
    %41 = vector.load %arg2[%c1_53, %c1_54, %c0_55, %c0_56] : memref<2x3x72x128xbf16, #tpu.memory_space<vmem>>, vector<1x1x72x128xbf16>
    %42 = vector.shape_cast %41 : vector<1x1x72x128xbf16> to vector<72x128xbf16>
    %cst_57 = arith.constant dense<0.000000e+00> : vector<16x128xf32>
    %43 = tpu.matmul %28, %42, %cst_57 {dimension_numbers = #tpu.dot_dimension_numbers<[1], [0], [0], [1], [0, 0, 1, 1], [], []>} : vector<16x72xbf16>, vector<72x128xbf16>, vector<16x128xf32> -> vector<16x128xf32>
    %44 = arith.addf %25, %43 : vector<16x128xf32>
    %c0_58 = arith.constant 0 : index
    %c2_59 = arith.constant 2 : index
    %c1_60 = arith.constant 1 : index
    %c0_61 = arith.constant 0 : index
    %45 = vector.load %arg1[%c0_58, %c2_59, %c1_60, %c0_61] : memref<1x4x9x72xbf16, #tpu.memory_space<vmem>>, vector<1x2x8x72xbf16>
    %46 = vector.shape_cast %45 : vector<1x2x8x72xbf16> to vector<2x8x72xbf16>
    %47 = vector.shape_cast %46 : vector<2x8x72xbf16> to vector<16x72xbf16>
    %c0_62 = arith.constant 0 : index
    %c2_63 = arith.constant 2 : index
    %c0_64 = arith.constant 0 : index
    %c0_65 = arith.constant 0 : index
    %48 = vector.load %arg2[%c0_62, %c2_63, %c0_64, %c0_65] : memref<2x3x72x128xbf16, #tpu.memory_space<vmem>>, vector<1x1x72x128xbf16>
    %49 = vector.shape_cast %48 : vector<1x1x72x128xbf16> to vector<72x128xbf16>
    %cst_66 = arith.constant dense<0.000000e+00> : vector<16x128xf32>
    %50 = tpu.matmul %47, %49, %cst_66 {dimension_numbers = #tpu.dot_dimension_numbers<[1], [0], [0], [1], [0, 0, 1, 1], [], []>} : vector<16x72xbf16>, vector<72x128xbf16>, vector<16x128xf32> -> vector<16x128xf32>
    %51 = arith.addf %40, %50 : vector<16x128xf32>
    %c1_67 = arith.constant 1 : index
    %c2_68 = arith.constant 2 : index
    %c0_69 = arith.constant 0 : index
    %c0_70 = arith.constant 0 : index
    %52 = vector.load %arg2[%c1_67, %c2_68, %c0_69, %c0_70] : memref<2x3x72x128xbf16, #tpu.memory_space<vmem>>, vector<1x1x72x128xbf16>
    %53 = vector.shape_cast %52 : vector<1x1x72x128xbf16> to vector<72x128xbf16>
    %cst_71 = arith.constant dense<0.000000e+00> : vector<16x128xf32>
    %54 = tpu.matmul %47, %53, %cst_71 {dimension_numbers = #tpu.dot_dimension_numbers<[1], [0], [0], [1], [0, 0, 1, 1], [], []>} : vector<16x72xbf16>, vector<72x128xbf16>, vector<16x128xf32> -> vector<16x128xf32>
    %55 = arith.addf %44, %54 : vector<16x128xf32>
    %56 = arith.maximumf %32, %36 : vector<16x128xf32>
    %57 = arith.maximumf %51, %55 : vector<16x128xf32>
    %58 = arith.maximumf %56, %57 : vector<16x128xf32>
    %c0_72 = arith.constant 0 : index
    %c0_73 = arith.constant 0 : index
    %59 = vector.load %arg3[%c0_72, %c0_73] : memref<1x128xf32, #tpu.memory_space<vmem>>, vector<1x128xf32>
    %60 = vector.broadcast %59 : vector<1x128xf32> to vector<16x128xf32>
    %61 = arith.addf %58, %60 : vector<16x128xf32>
    %cst_74 = arith.constant 0.000000e+00 : f32
    %62 = vector.broadcast %cst_74 : f32 to vector<16x128xf32>
    %63 = arith.maximumf %61, %62 : vector<16x128xf32>
    %64 = arith.truncf %63 : vector<16x128xf32> to vector<16x128xbf16>
    %c0_75 = arith.constant 0 : index
    %c0_76 = arith.constant 0 : index
    %c0_77 = arith.constant 0 : index
    %65 = vector.load %arg4[%c0_75, %c0_76, %c0_77] : memref<1x16x128xbf16, #tpu.memory_space<vmem>>, vector<1x16x128xbf16>
    %66 = vector.shape_cast %65 : vector<1x16x128xbf16> to vector<16x128xbf16>
    %67 = vector.shape_cast %64 : vector<16x128xbf16> to vector<1x16x128xbf16>
    tpu.vector_store %arg4[%c0_75, %c0_76, %c0_77], %67 {strides = array<i32>} : memref<1x16x128xbf16, #tpu.memory_space<vmem>>, vector<1x16x128xbf16>,
    return
  }
  func.func @transform_0(%arg0: i32) -> (i32, i32, i32, i32) {
    %c0_i32 = arith.constant 0 : i32
    %c0_i32_0 = arith.constant 0 : i32
    %c0_i32_1 = arith.constant 0 : i32
    %c0_i32_2 = arith.constant 0 : i32
    return %arg0, %c0_i32, %c0_i32_0, %c0_i32_1 : i32, i32, i32, i32
  }
  func.func @transform_1(%arg0: i32) -> (i32, i32, i32, i32) {
    %c0_i32 = arith.constant 0 : i32
    %c0_i32_0 = arith.constant 0 : i32
    %c0_i32_1 = arith.constant 0 : i32
    %c0_i32_2 = arith.constant 0 : i32
    %c0_i32_3 = arith.constant 0 : i32
    return %c0_i32, %c0_i32_0, %c0_i32_1, %c0_i32_2 : i32, i32, i32, i32
  }
  func.func @transform_2(%arg0: i32) -> (i32, i32) {
    %c0_i32 = arith.constant 0 : i32
    %c0_i32_0 = arith.constant 0 : i32
    %c0_i32_1 = arith.constant 0 : i32
    return %c0_i32, %c0_i32_0 : i32, i32
  }
  func.func @transform_3(%arg0: i32) -> (i32, i32, i32) {
    %c0_i32 = arith.constant 0 : i32
    %c0_i32_0 = arith.constant 0 : i32
    %c0_i32_1 = arith.constant 0 : i32
    return %arg0, %c0_i32, %c0_i32_0 : i32, i32, i32
  }
}

</mosaic_0001>

<bundles_post_ra>
// kernel: tpu_custom_call.1
= control target key start
LH: loop header
LB: loop body
LE: loop exit
PB: predicated region body
PF: predicated region fallthrough
CT: control target
= control target key end

     0   :  { %8 = vsyncpa [#allocation3], 0  ;;  %s2096_s0 = inlined_call_operand.vmem [shape: bf16[2,4,9,72], index: 0, kind: input, shape index: {}]   ;;  %s2097_s1 = inlined_call_operand.hbm [shape: bf16[2,3,72,128], index: 1, kind: input, shape index: {}]   ;;  %s2098_s2 = inlined_call_operand.vmem [shape: f32[1,128], index: 2, kind: input, shape index: {}]   ;;  %s2099_s3 = inlined_call_operand.hbm [shape: bf16[2,16,128], index: 3, kind: output, shape index: {}]  }
   0x1   :  { %9 = vsyncpa [#allocation4], 0 }
   0x2   :  { %11 = vsyncpa [#allocation4 + $0x1], 0  ;;  %s1703_s12 = smov 0   ;;  %s1705_s13 = smov 0  }
   0x3   :  { %s1707_s14 = smov 0   ;;  %s1709_s15 = smov 0  }
   0x4 LB: > { %s1724_s16 = sadd.s32 4294967295, %s1673_s15   ;;  %s1141_s17 = sadd.s32 4294967294, %s1673_s15   ;;  %s1673_s15 = sphi %s1709_s15, %s2117_s15   ;;  %s1669_s14 = sphi %s1707_s14, %s2116_s14   ;;  %s1665_s13 = sphi %s1705_s13, %s2115_s13   ;;  %s1661_s12 = sphi %s1703_s12, %s2114_s12  }
   0x5   : > { %s1728_s18 = sadd.s32 1, %s1673_s15   ;;  %s92_s19 = sadd.s32 1, %s1669_s14 }
   0x6   : > { %s89_s20 = ssub.s32 %s1673_s15, %s1728_s18  ;;  %p102_p0 = scmp.ne.s32.totalorder %s1669_s14, %s1665_s13 }
   0x7   : > { %p90_p1 = scmp.eq.s32.totalorder %s89_s20, 0  ;;  %p103_p2 = scmp.eq.s32.totalorder %s1724_s16, 1 }
   0x8   : > { %p108_p3 = scmp.ne.s32.totalorder %s1665_s13, %s1661_s12  ;;  %p109_p4 = scmp.eq.s32.totalorder %s1141_s17, 1 }
   0x9   : > { %s1739_s21 = scalar_select %p90_p1, %s1669_s14, %s92_s19  }
   0xa   : > { %p1741_p5 = por %p103_p2, %p102_p0  ;;  %p1745_p6 = por %p109_p4, %p108_p3 }
   0xb   : > { %p1142_p7 = scmp.ge.s32.totalorder %s1673_s15, 1  ;;  %p116_p8 = scmp.lt.s32.totalorder %s1673_s15, 3 }
   0xc   : > { %s2103_s22 = scalar_select %p1741_p5, 1, 0 }
   0xd   : > { %s2104_s23 = scalar_select %p1745_p6, 1, 0 }
   0xe   : > { %p2100_p9 = scmp.eq.s32.totalorder %s1724_s16, 0  ;;  %p1752_p10 = pnand %p1142_p7, %p116_p8 }
   0xf   : > { %s1675_s25 = smov [#allocation2]   ;;  %s1579_s30 = scalar_lea.hbm %s2097_s1, 3456 }
  0x10   : > { %s2105_s24 = scalar_select %p1752_p10, 1, 0 }
  0x11   : > { %s128_s26 = sshll.u32 %s1675_s25, 4  ;;  %p1497_p11 = pneg %p1752_p10  ;;  %s129_s26 = int_to_ptr.vmem [resolvable:$true] %s128_s26 }
  0x12   : > { %p1580_p13 = scmp.ne.s32.totalorder %s2097_s1, %s1579_s30  ;;  %p1586_p3 = scmp.lt.u32.totalorder %s1579_s30, %s2097_s1 }
  0x13   : > { %p1760_p12 = pnand %p2100_p9, %p1497_p11 }
  0x15   : > { %p1581_p0 = pneg %p1760_p12 }
  0x17   : > { %p1582_p1 = pnand %p1581_p0, %p1580_p13 }
  0x19   : > { %p1583_p2 = pneg %p1582_p1 }
  0x1b   : > { %p1588_p4 = pnand %p1586_p3, %p1583_p2 }
  0x1d   : > { %1591 = shalt.err (!%p1588_p4)
}
  0x1e   : > { %s1592_s8 = scalar_lea.vmem %s129_s26, 3456  ;;  %p1600_p9 = scmp.lt.s32.totalorder %s129_s26, %s129_s26 }
  0x1f   : > { %p1593_p7 = scmp.ne.s32.totalorder %s129_s26, %s1592_s8  ;;  %p1601_p6 = scmp.lt.s32.totalorder %s1592_s8, %s1592_s8 }
  0x21   : > { %p1595_p8 = pnand %p1593_p7, %p1581_p0  ;;  %p1602_p5 = por %p1601_p6, %p1600_p9 }
  0x23   : > { %p1596_p11 = pneg %p1595_p8 }
  0x25   : > { %p1603_p10 = pnand %p1602_p5, %p1596_p11 }
  0x27   : > { %1606 = shalt.err (!%p1603_p10)
}
  0x28   : > { %s1676_s9 = smov 64   ;;  %s1677_s10 = smov 4  }
  0x29   : > { %1500 = dma.hbm_to_vmem [thread:$0]  (!%p1760_p12), %s2097_s1, 3456, %s129_s26, [#allocation3], %s1676_s9, %s1676_s9, %s1677_s10  }
  0x2a   : > { %p2107_p13 = scmp.ne.s32.totalorder %s2105_s24, 0 }
  0x2b   : > { %p2108_p1 = scmp.eq.s32.totalorder (!%p2107_p13), %s1724_s16, 0 }
  0x2c   : > { %155 = sbr.rel (%p2107_p13) target bundleno = 413 (0x19d), region = 32 }
  0x33   : > { %1652 = dma.done.wait (%p2108_p1), [#allocation3], 3456   ;;  %p2109_p0 = pmov %p2108_p1 }
  0x34   : > { %v1678_v0 = vmov 0.0   ;;  %vm1679_vm0 = vmmov 0   ;;  %p179_p5 = scmp.lt.s32.totalorder %s1724_s16, 1  ;;  %v1793_v1 = vld [vmem:[#allocation2 + $0x24] sm:$0xff]   ;;  %v1795_v2 = vld [vmem:[#allocation2 + $0x90] sm:$0xff]   ;;  %v1803_v4 = vld [vmem:[#allocation2 + $0x98] sm:$0xff]  }
  0x35   : > { %1654 = vsyncadd (%p2109_p0), [#allocation3], 4294963840  ;;  %1291 = vmatprep.subr.bf16.mxu0 %v1678_v0  ;;  %1319 = vmatprep.subr.bf16.mxu1 %v1678_v0  ;;  %v1799_v3 = vld [vmem:[#allocation2 + $0x2c] sm:$0xff]   ;;  %v1807_v5 = vld [vmem:[#allocation2 + $0x34] sm:$0xff]   ;;  %vm255_vm1 = vcmask 1043456   ;;  %vm251_vm2 = vcmask 588800  }
  0x36   : > { %1301 = vmatprep.mubr.msk.bf16.mxu0 %vm1679_vm0, %v1678_v0  ;;  %1329 = vmatprep.mubr.msk.bf16.mxu1 %vm1679_vm0, %v1678_v0  ;;  %s180_s19 = scalar_select %p179_p5, %s1724_s16, 1  ;;  %v1811_v6 = vld [vmem:[#allocation2 + $0xa0] sm:$0xff]   ;;  %v1822_v8 = vld [vmem:[#allocation2 + $0xa8] sm:$0xff]   ;;  %v1556_v10 = vld [vmem:[#allocation2 + $0xb0] ss:$0 sps:$4 sm:$0xff]  }
  0x37   : > { %1292 = vmatpush3.bf16.msra.mxu0 %v1793_v1  ;;  %1320 = vmatpush3.bf16.msra.mxu1 %v1795_v2  ;;  %v1819_v7 = vld [vmem:[#allocation2 + $0x3c] sm:$0xff]   ;;  %v1555_v9 = vld [vmem:[#allocation2 + $0x44] ss:$0 sps:$4 sm:$0xff]   ;;  %v1835_v12 = vsel %vm255_vm1, %v1556_v10, 0  ;;  %v1845_v15 = vld [vmem:[#allocation2 + $0x6c] sm:$0xff]   ;;  %s176_s27 = sand.u32 1, %s1665_s13  }
  0x38   : > { %1293 = vmatprep.subr.bf16.mxu0 %v1678_v0  ;;  %1321 = vmatprep.subr.bf16.mxu1 %v1678_v0  ;;  %s1210_s20 = sshll.u32 %s180_s19, 5  ;;  %v1831_v11 = vsel %vm255_vm1, %v1555_v9, 0  ;;  %v1841_v14 = vld [vmem:[#allocation2] sm:$0xff]   ;;  %v1850_v16 = vld [vmem:[#allocation2 + $0x8] sm:$0xff]   ;;  %v1857_v17 = vld [vmem:[#allocation2 + $0x74] sm:$0xff]   ;;  %s1147_s28 = sshll.u32 %s176_s27, 3 }
  0x39   : > { %s1817_s26 = scalar_lea.vmem %s2096_s0, %s1210_s20  ;;  %v1865_v18 = vld [vmem:[#allocation2 + $0x10] sm:$0xff]   ;;  %v1869_v19 = vld [vmem:[#allocation2 + $0x7c] sm:$0xff]   ;;  %v1877_v21 = vld [vmem:[#allocation2 + $0x84] sm:$0xff]   ;;  %vm535_vm3 = vsmask.f32 3328  ;;  %s1213_s4 = sshll.u32 %s1724_s16, 7 }
  0x3a   : > { %v1838_v13 = vld [vmem:[%s1817_s26 + $0x10] ss:$8 sps:$4 sm:$0xff]   ;;  %v1566_v22 = vld [vmem:[#allocation2 + $0x20] ss:$0 sps:$4 sm:$0xff]   ;;  %v1567_v23 = vld [vmem:[#allocation2 + $0x8c] ss:$0 sps:$4 sm:$0xff]   ;;  %s2051_s9 = scalar_lea.hbm %s2099_s3, %s1213_s4 }
  0x3b   : > { %1294 = vmatpush3.bf16.msra.mxu0 %v1799_v3  ;;  %1322 = vmatpush3.bf16.msra.mxu1 %v1803_v4  ;;  %v1873_v20 = vld [vmem:[#allocation2 + $0x18] sm:$0xff]   ;;  %v1884_v24 = vsel %vm255_vm1, %v1566_v22, 0  ;;  %v531_v25 = vld [vmem:[%s1817_s26] sm:$0xf]  ;;  %v533_v26 = vld [vmem:[%s1817_s26 + $0x8] sm:$0xf] }
  0x3c   : > { %1295 = vmatprep.subr.bf16.mxu0 %v1678_v0  ;;  %1323 = vmatprep.subr.bf16.mxu1 %v1678_v0  ;;  %v1890_v27 = vsel %vm255_vm1, %v1567_v23, 0  ;;  %v1568_v28 = vld [vmem:[%s1817_s26] ss:$8 sps:$4 sm:$0xff]   ;;  %v539_v30 = vshrl.u32 %v531_v25, 16  ;;  %v542_v31 = vshll.u32 %v531_v25, 16  ;;  %v553_v32 = vshrl.u32 %v533_v26, 16 }
  0x3d   : > { %v1894_v29 = vld [vmem:[#allocation2 + $0x48] sm:$0xff]   ;;  %v556_v33 = vshll.u32 %v533_v26, 16  ;;  %v1898_v34 = vld [vmem:[#allocation2 + $0xb4] sm:$0xff]   ;;  %v1908_v40 = vld [vmem:[#allocation2 + $0xbc] sm:$0xff]   ;;  %vm536_vm4 = vsmask.f32 7440 }
  0x3e   : > { %v1904_v35 = vld [vmem:[#allocation2 + $0x50] sm:$0xff]   ;;  %v541_v36 = vrot.slane %v539_v30, 4  ;;  %v544_v37 = vrot.slane %v542_v31, 5  ;;  %v555_v38 = vrot.slane %v553_v32, 4  ;;  %v532_v41 = vld [vmem:[%s1817_s26 + $0x4] sm:$0x1]  ;;  %vm1932_vm5 = vmor %vm535_vm3, %vm536_vm4 }
  0x3f   : > { %1296 = vmatpush3.bf16.msra.mxu0 %v1807_v5  ;;  %1324 = vmatpush3.bf16.msra.mxu1 %v1811_v6  ;;  %v558_v39 = vrot.slane %v556_v33, 5  ;;  %v534_v42 = vld [vmem:[%s1817_s26 + $0xc] sm:$0x1]  ;;  %v1918_v43 = vld [vmem:[#allocation2 + $0x58] sm:$0xff]   ;;  %v548_v45 = vshll.u32 %v532_v41, 16  ;;  %v1922_v48 = vld [vmem:[#allocation2 + $0xc4] sm:$0xff]  }
  0x40   : > { %1297 = vmatprep.subr.bf16.mxu0 %v1678_v0  ;;  %1325 = vmatprep.subr.bf16.mxu1 %v1678_v0  ;;  %v545_v44 = vor.u32 %v544_v37, %v541_v36  ;;  %v562_v47 = vshll.u32 %v534_v42, 16  ;;  %v1926_v49 = vld [vmem:[#allocation2 + $0x60] sm:$0xff]   ;;  %v1930_v54 = vld [vmem:[#allocation2 + $0xcc] sm:$0xff]   ;;  %v1577_v55 = vld [vmem:[#allocation2 + $0x68] ss:$0 sps:$4 sm:$0xff]   ;;  %s178_s5 = scalar_lea.vmem [#allocation5], %s1147_s28 }
  0x41   : > { %v559_v46 = vor.u32 %v558_v39, %v555_v38  ;;  %v550_v51 = vrot.slane %v548_v45, 5  ;;  %v1578_v57 = vld [vmem:[#allocation2 + $0xd4] ss:$0 sps:$4 sm:$0xff]   ;;  %v1945_v60 = vsel %vm255_vm1, %v1577_v55, 0  ;;  %v1195_v63 = vld [vmem:[%s1817_s26 + $0x10] sm:$0xf] }
  0x42   : > { %v546_v50 = vrot.slane %v545_v44, 4  ;;  %v564_v53 = vrot.slane %v562_v47, 5  ;;  %v1949_v61 = vsel %vm255_vm1, %v1578_v57, 0  ;;  %v1196_v10 = vld [vmem:[%s1817_s26 + $0x14] sm:$0x1]  ;;  %s1067_s6 = sshll.u32 %s178_s5, 4  ;;  %s2053_s6 = int_to_ptr.vmem [resolvable:$true] %s1067_s6 }
  0x43   : > { %1298 = vmatpush3.bf16.msra.mxu0 %v1819_v7  ;;  %1326 = vmatpush3.bf16.msra.mxu1 %v1822_v8  ;;  %v560_v52 = vrot.slane %v559_v46, 4  ;;  %v1202_v38 = vld [vmem:[%s2098_s2] ss:$0 sm:$0xff]  ;;  %s2055_s10 = scalar_lea.sflag [#allocation4], %s176_s27  ;;  %s1607_s11 = scalar_lea.vmem %s2053_s6, 128 }
  0x44   : > { %1299 = vmatprep.subr.bf16.mxu0 %v1678_v0  ;;  %1327 = vmatprep.subr.bf16.mxu1 %v1678_v0  ;;  %v551_v58 = vsel %vm1932_vm5, %v546_v50, %v550_v51  ;;  %p1608_p6 = scmp.ne.s32.totalorder %s2053_s6, %s1607_s11  ;;  %p2112_p9 = scmp.ne.s32.totalorder %s2103_s22, 0 }
  0x45   : > { %v565_v59 = vsel %vm1932_vm5, %v560_v52, %v564_v53  ;;  %s1680_s16 = smov [#allocation5]  }
  0x46   : > { %v1178_v62 = vcombine.low %v551_v58, %v565_v59  ;;  %p1609_p10 = pnand %p1608_p6, %p2112_p9  ;;  %s1611_s17 = sshll.u32 %s1680_s16, 4  ;;  %s1612_s17 = int_to_ptr.vmem [resolvable:$false] %s1611_s17 }
  0x47   : > { %1300 = vmatpush3.bf16.msra.mxu0 %v1831_v11  ;;  %1328 = vmatpush3.bf16.msra.mxu1 %v1835_v12  ;;  %s1613_s19 = scalar_lea.vmem %s1612_s17, 256  ;;  %p1614_p2 = scmp.lt.s32.totalorder %s2053_s6, %s1612_s17 }
  0x48   : > { %1305 = vmatprep.subr.bf16.mxu0 %v1678_v0  ;;  %1333 = vmatprep.subr.bf16.mxu1 %v1678_v0  ;;  %p1610_p12 = pneg %p1609_p10  ;;  %p1615_p3 = scmp.lt.s32.totalorder %s1613_s19, %s1607_s11 }
  0x4a   : > { %1302 = vmatmul.mubr.msk.bf16.vlgmr.msra.gmra.mrb[0].mxu0 %vm251_vm2, %v1838_v13  ;;  %1330 = vmatmul.mubr.msk.bf16.vlgmr.msra.gmra.mrb[0].mxu1 %vm251_vm2, %v1838_v13  ;;  %p1616_p4 = por %p1615_p3, %p1614_p2 }
  0x4b   : > { %1306 = vmatpush3.bf16.msra.mxu0 %v1841_v14  ;;  %1334 = vmatpush3.bf16.msra.mxu1 %v1845_v15 }
  0x4c   : > { %1307 = vmatprep.subr.bf16.mxu0 %v1678_v0  ;;  %1335 = vmatprep.subr.bf16.mxu1 %v1678_v0  ;;  %p1617_p7 = pnand %p1616_p4, %p1610_p12 }
  0x4d   : > { %1315 = vmatprep.mubr.msk.bf16.mxu0 %vm1679_vm0, %v1678_v0  ;;  %1343 = vmatprep.mubr.msk.bf16.mxu1 %vm1679_vm0, %v1678_v0 }
  0x4f   : > { %1308 = vmatpush3.bf16.msra.mxu0 %v1850_v16  ;;  %1336 = vmatpush3.bf16.msra.mxu1 %v1857_v17 }
  0x50   : > { %1309 = vmatprep.subr.bf16.mxu0 %v1678_v0  ;;  %1337 = vmatprep.subr.bf16.mxu1 %v1678_v0 }
  0x53   : > { %1310 = vmatpush3.bf16.msra.mxu0 %v1865_v18  ;;  %1338 = vmatpush3.bf16.msra.mxu1 %v1869_v19 }
  0x54   : > { %1311 = vmatprep.subr.bf16.mxu0 %v1678_v0  ;;  %1339 = vmatprep.subr.bf16.mxu1 %v1678_v0 }
  0x57   : > { %1312 = vmatpush3.bf16.msra.mxu0 %v1873_v20  ;;  %1340 = vmatpush3.bf16.msra.mxu1 %v1877_v21 }
  0x58   : > { %1313 = vmatprep.subr.bf16.mxu0 %v1678_v0  ;;  %1341 = vmatprep.subr.bf16.mxu1 %v1678_v0 }
  0x5b   : > { %1314 = vmatpush3.bf16.msra.mxu0 %v1884_v24  ;;  %1342 = vmatpush3.bf16.msra.mxu1 %v1890_v27 }
  0x5c   : > { %1347 = vmatprep.subr.bf16.mxu0 %v1678_v0  ;;  %1361 = vmatprep.subr.bf16.mxu1 %v1678_v0 }
  0x5e   : > { %1316 = vmatmul.mubr.msk.bf16.vlgmr.msra.gmra.mrb[0].mxu0 %vm251_vm2, %v1568_v28  ;;  %1344 = vmatmul.mubr.msk.bf16.vlgmr.msra.gmra.mrb[0].mxu1 %vm251_vm2, %v1568_v28 }
  0x5f   : > { %1348 = vmatpush3.bf16.msra.mxu0 %v1894_v29  ;;  %1362 = vmatpush3.bf16.msra.mxu1 %v1898_v34 }
  0x60   : > { %1349 = vmatprep.subr.bf16.mxu0 %v1678_v0  ;;  %1363 = vmatprep.subr.bf16.mxu1 %v1678_v0 }
  0x61   : > { %1357 = vmatprep.mubr.msk.bf16.mxu0 %vm1679_vm0, %v1678_v0  ;;  %1371 = vmatprep.mubr.msk.bf16.mxu1 %vm1679_vm0, %v1678_v0 }
  0x63   : > { %1350 = vmatpush3.bf16.msra.mxu0 %v1904_v35  ;;  %1364 = vmatpush3.bf16.msra.mxu1 %v1908_v40 }
  0x64   : > { %1351 = vmatprep.subr.bf16.mxu0 %v1678_v0  ;;  %1365 = vmatprep.subr.bf16.mxu1 %v1678_v0 }
  0x67   : > { %1352 = vmatpush3.bf16.msra.mxu0 %v1918_v43  ;;  %1366 = vmatpush3.bf16.msra.mxu1 %v1922_v48 }
  0x68   : > { %1353 = vmatprep.subr.bf16.mxu0 %v1678_v0  ;;  %1367 = vmatprep.subr.bf16.mxu1 %v1678_v0 }
  0x6b   : > { %1354 = vmatpush3.bf16.msra.mxu0 %v1926_v49  ;;  %1368 = vmatpush3.bf16.msra.mxu1 %v1930_v54 }
  0x6c   : > { %1355 = vmatprep.subr.bf16.mxu0 %v1678_v0  ;;  %1369 = vmatprep.subr.bf16.mxu1 %v1678_v0 }
  0x6f   : > { %1356 = vmatpush3.bf16.msra.mxu0 %v1945_v60  ;;  %1370 = vmatpush3.bf16.msra.mxu1 %v1949_v61 }
  0x70   : > { %1375 = vmatprep.subr.bf16.mxu0 %v1678_v0  ;;  %1403 = vmatprep.subr.bf16.mxu1 %v1678_v0 }
  0x72   : > { %1358 = vmatmul.mubr.msk.bf16.vlgmr.msra.gmra.mrb[0].mxu0 %vm251_vm2, %v1178_v62  ;;  %1372 = vmatmul.mubr.msk.bf16.vlgmr.msra.gmra.mrb[0].mxu1 %vm251_vm2, %v1178_v62 }
  0x73   : > { %1376 = vmatpush3.bf16.msra.mxu0 %v1793_v1  ;;  %1404 = vmatpush3.bf16.msra.mxu1 %v1795_v2  ;;  %v1197_v1 = vld [vmem:[%s1817_s26 + $0x18] sm:$0xf]  ;;  %v907_v2 = vshrl.u32 %v1195_v63, 16 }
  0x74   : > { %1377 = vmatprep.subr.bf16.mxu0 %v1678_v0  ;;  %1405 = vmatprep.subr.bf16.mxu1 %v1678_v0 }
  0x75   : > { %1385 = vmatprep.mubr.msk.bf16.mxu0 %vm1679_vm0, %v1678_v0  ;;  %1413 = vmatprep.mubr.msk.bf16.mxu1 %vm1679_vm0, %v1678_v0 }
  0x77   : > { %1378 = vmatpush3.bf16.msra.mxu0 %v1799_v3  ;;  %1406 = vmatpush3.bf16.msra.mxu1 %v1803_v4  ;;  %v910_v3 = vshll.u32 %v1195_v63, 16  ;;  %v921_v4 = vshrl.u32 %v1197_v1, 16 }
  0x78   : > { %1379 = vmatprep.subr.bf16.mxu0 %v1678_v0  ;;  %1407 = vmatprep.subr.bf16.mxu1 %v1678_v0 }
  0x7b   : > { %1380 = vmatpush3.bf16.msra.mxu0 %v1807_v5  ;;  %1408 = vmatpush3.bf16.msra.mxu1 %v1811_v6  ;;  %v924_v5 = vshll.u32 %v1197_v1, 16  ;;  %v909_v6 = vrot.slane %v907_v2, 4 }
  0x7c   : > { %1381 = vmatprep.subr.bf16.mxu0 %v1678_v0  ;;  %1409 = vmatprep.subr.bf16.mxu1 %v1678_v0 }
  0x7d   : > { %v926_v9 = vrot.slane %v924_v5, 5 }
  0x7f   : > { %1382 = vmatpush3.bf16.msra.mxu0 %v1819_v7  ;;  %1410 = vmatpush3.bf16.msra.mxu1 %v1822_v8  ;;  %v912_v7 = vrot.slane %v910_v3, 5  ;;  %v923_v8 = vrot.slane %v921_v4, 4 }
  0x80   : > { %1383 = vmatprep.subr.bf16.mxu0 %v1678_v0  ;;  %1411 = vmatprep.subr.bf16.mxu1 %v1678_v0 }
  0x83   : > { %1384 = vmatpush3.bf16.msra.mxu0 %v1831_v11  ;;  %1412 = vmatpush3.bf16.msra.mxu1 %v1835_v12  ;;  %v1198_v11 = vld [vmem:[%s1817_s26 + $0x1c] sm:$0x1]  ;;  %v913_v12 = vor.u32 %v912_v7, %v909_v6 }
  0x84   : > { %1389 = vmatprep.subr.bf16.mxu0 %v1678_v0  ;;  %1417 = vmatprep.subr.bf16.mxu1 %v1678_v0 }
  0x86   : > { %1386 = vmatmul.mubr.msk.bf16.vlgmr.msra.gmra.mrb[4].mxu0 %vm251_vm2, %v1178_v62  ;;  %1414 = vmatmul.mubr.msk.bf16.vlgmr.msra.gmra.mrb[4].mxu1 %vm251_vm2, %v1178_v62 }
  0x87   : > { %1390 = vmatpush3.bf16.msra.mxu0 %v1841_v14  ;;  %1418 = vmatpush3.bf16.msra.mxu1 %v1845_v15  ;;  %v927_v14 = vor.u32 %v926_v9, %v923_v8  ;;  %v930_v15 = vshll.u32 %v1198_v11, 16 }
  0x88   : > { %1391 = vmatprep.subr.bf16.mxu0 %v1678_v0  ;;  %1419 = vmatprep.subr.bf16.mxu1 %v1678_v0 }
  0x89   : > { %1399 = vmatprep.mubr.msk.bf16.mxu0 %vm1679_vm0, %v1678_v0  ;;  %1427 = vmatprep.mubr.msk.bf16.mxu1 %vm1679_vm0, %v1678_v0 }
  0x8b   : > { %1392 = vmatpush3.bf16.msra.mxu0 %v1850_v16  ;;  %1420 = vmatpush3.bf16.msra.mxu1 %v1857_v17  ;;  %v914_v16 = vrot.slane %v913_v12, 4 }
  0x8c   : > { %1393 = vmatprep.subr.bf16.mxu0 %v1678_v0  ;;  %1421 = vmatprep.subr.bf16.mxu1 %v1678_v0 }
  0x8f   : > { %1394 = vmatpush3.bf16.msra.mxu0 %v1865_v18  ;;  %1422 = vmatpush3.bf16.msra.mxu1 %v1869_v19  ;;  %v928_v18 = vrot.slane %v927_v14, 4  ;;  %v932_v19 = vrot.slane %v930_v15, 5 }
  0x90   : > { %1395 = vmatprep.subr.bf16.mxu0 %v1678_v0  ;;  %1423 = vmatprep.subr.bf16.mxu1 %v1678_v0 }
  0x93   : > { %1396 = vmatpush3.bf16.msra.mxu0 %v1873_v20  ;;  %1424 = vmatpush3.bf16.msra.mxu1 %v1877_v21  ;;  %v933_v21 = vsel %vm1932_vm5, %v928_v18, %v932_v19 }
  0x94   : > { %1397 = vmatprep.subr.bf16.mxu0 %v1678_v0  ;;  %1425 = vmatprep.subr.bf16.mxu1 %v1678_v0 }
  0x97   : > { %1398 = vmatpush3.bf16.msra.mxu0 %v1884_v24  ;;  %1426 = vmatpush3.bf16.msra.mxu1 %v1890_v27 }
  0x98   : > { %1431 = vmatprep.subr.bf16.mxu0 %v1678_v0  ;;  %1445 = vmatprep.subr.bf16.mxu1 %v1678_v0 }
  0x9a   : > { %1400 = vmatmul.mubr.msk.bf16.vlgmr.msra.gmra.mrb[4].mxu0 %vm251_vm2, %v1838_v13  ;;  %1428 = vmatmul.mubr.msk.bf16.vlgmr.msra.gmra.mrb[4].mxu1 %vm251_vm2, %v1838_v13  ;;  %v916_v13 = vshll.u32 %v1196_v10, 16 }
  0x9b   : > { %1432 = vmatpush3.bf16.msra.mxu0 %v1894_v29  ;;  %1446 = vmatpush3.bf16.msra.mxu1 %v1898_v34 }
  0x9c   : > { %1433 = vmatprep.subr.bf16.mxu0 %v1678_v0  ;;  %1447 = vmatprep.subr.bf16.mxu1 %v1678_v0  ;;  %v918_v17 = vrot.slane %v916_v13, 5 }
  0x9d   : > { %1441 = vmatprep.mubr.msk.bf16.mxu0 %vm1679_vm0, %v1678_v0  ;;  %1455 = vmatprep.mubr.msk.bf16.mxu1 %vm1679_vm0, %v1678_v0 }
  0x9e   : > { %v919_v20 = vsel %vm1932_vm5, %v914_v16, %v918_v17 }
  0x9f   : > { %1434 = vmatpush3.bf16.msra.mxu0 %v1904_v35  ;;  %1448 = vmatpush3.bf16.msra.mxu1 %v1908_v40  ;;  %v1199_v22 = vcombine.low %v919_v20, %v933_v21 }
  0xa0   : > { %1435 = vmatprep.subr.bf16.mxu0 %v1678_v0  ;;  %1449 = vmatprep.subr.bf16.mxu1 %v1678_v0 }
  0xa3   : > { %1436 = vmatpush3.bf16.msra.mxu0 %v1918_v43  ;;  %1450 = vmatpush3.bf16.msra.mxu1 %v1922_v48 }
  0xa4   : > { %1437 = vmatprep.subr.bf16.mxu0 %v1678_v0  ;;  %1451 = vmatprep.subr.bf16.mxu1 %v1678_v0 }
  0xa7   : > { %1438 = vmatpush3.bf16.msra.mxu0 %v1926_v49  ;;  %1452 = vmatpush3.bf16.msra.mxu1 %v1930_v54 }
  0xa8   : > { %1439 = vmatprep.subr.bf16.mxu0 %v1678_v0  ;;  %1453 = vmatprep.subr.bf16.mxu1 %v1678_v0 }
  0xab   : > { %1440 = vmatpush3.bf16.msra.mxu0 %v1945_v60  ;;  %1454 = vmatpush3.bf16.msra.mxu1 %v1949_v61 }
  0xae   : > { %1442 = vmatmul.mubr.msk.bf16.vlgmr.msra.gmra.mrb[4].mxu0 %vm251_vm2, %v1199_v22  ;;  %1456 = vmatmul.mubr.msk.bf16.vlgmr.msra.gmra.mrb[4].mxu1 %vm251_vm2, %v1199_v22 }
 0x145   : > { %v646_v23 = vpop.f32.mrb[0].mxu0  ;;  %v729_v24 = vpop.f32.mrb[0].mxu1 }
 0x146   : > { %v1359_v25 = vpop.f32.mrb[1].mxu0  ;;  %v1026_v26 = vmax.f32 %v646_v23, %v729_v24  ;;  %v1373_v27 = vpop.f32.mrb[1].mxu1 }
 0x147   : > { %v649_v28 = vpop.f32.mrb[2].mxu0  ;;  %v732_v29 = vpop.f32.mrb[2].mxu1 }
 0x148   : > { %v1360_v30 = vpop.f32.mrb[3].mxu0  ;;  %v1027_v31 = vmax.f32 %v649_v28, %v732_v29  ;;  %v1374_v0 = vpop.f32.mrb[3].mxu1 }
 0x181   : > { %v974_v32 = vpop.f32.mrb[4].mxu0  ;;  %v1017_v33 = vpop.f32.mrb[4].mxu1 }
 0x182   : > { %v1443_v34 = vpop.f32.mrb[5].mxu0  ;;  %v1028_v35 = vmax.f32 %v974_v32, %v1017_v33  ;;  %v1457_v36 = vpop.f32.mrb[5].mxu1 }
 0x183   : > { %v977_v37 = vpop.f32.mrb[6].mxu0  ;;  %v1020_v39 = vpop.f32.mrb[6].mxu1 }
 0x184   : > { %v1444_v40 = vpop.f32.mrb[7].mxu0  ;;  %v1030_v41 = vmax.f32 %v1026_v26, %v1028_v35  ;;  %v1029_v42 = vmax.f32 %v977_v37, %v1020_v39  ;;  %v1458_v43 = vpop.f32.mrb[7].mxu1 }
 0x186   : > { %v1039_v44 = vadd.f32 %v1202_v38, %v1030_v41  ;;  %v1031_v45 = vmax.f32 %v1027_v31, %v1029_v42 }
 0x188   : > { %v1040_v46 = vadd.f32 %v1202_v38, %v1031_v45  ;;  %v1041_v47 = vmax.f32 %v1039_v44, 0.0 }
 0x18a   : > { %v1042_v48 = vmax.f32 %v1040_v46, 0.0 }
 0x18c   : > { %v1217_v49 = vpack.c.bf16 %v1042_v48, %v1041_v47 }
 0x18e   : > { %1218 = vst [vmem:[%s178_s5] sm:$0xff] %v1217_v49  }
 0x18f   : > { %1620 = shalt.err (!%p1617_p7)
}
 0x190   : > { %s1621_s20 = scalar_lea.hbm %s2051_s9, 128  ;;  %s1625_s26 = scalar_lea.hbm %s2099_s3, 256 }
 0x191   : > { %p1622_p8 = scmp.ne.s32.totalorder %s2051_s9, %s1621_s20  ;;  %p1626_p1 = scmp.lt.u32.totalorder %s2051_s9, %s2099_s3 }
 0x192   : > { %p1627_p0 = scmp.lt.u32.totalorder %s1625_s26, %s1621_s20  ;;  %p1629_p6 = scmp.lt.u32.totalorder %s1621_s20, %s2051_s9 }
 0x193   : > { %p1623_p11 = pnand %p1622_p8, %p2112_p9 }
 0x194   : > { %p1628_p5 = por %p1627_p0, %p1626_p1 }
 0x195   : > { %p1624_p13 = pneg %p1623_p11 }
 0x196   : > { %p1630_p10 = por %p1629_p6, %p1628_p5 }
 0x198   : > { %p1631_p12 = pnand %p1630_p10, %p1624_p13 }
 0x19a   : > { %1634 = shalt.err (!%p1631_p12)
}
 0x19b   : > { %s1681_s29 = smov 64   ;;  %s1682_s30 = smov 4  }
 0x19c   : > { %1495 = dma.vmem_to_hbm [thread:$0]  (%p2112_p9), %s2053_s6, 128, %s2051_s9, %s2055_s10, %s1681_s29, %s1681_s29, %s1682_s30  }
 0x19d PF: > { %p1507_p2 = scmp.ge.s32.totalorder %s1673_s15, 2  ;;  %s1082_s4 = sand.u32 1, %s1661_s12  }
 0x19e   : > { %p2113_p3 = scmp.ne.s32.totalorder %s2104_s23, 0  ;;  %s1083_s5 = scalar_lea.sflag [#allocation4], %s1082_s4 }
 0x1a0   : > { %p1502_p4 = pnand %p1507_p2, %p2113_p3 }
 0x1a2   : > { %1656 = dma.done.wait (!%p1502_p4), %s1083_s5, 128  }
 0x1a3   : > { %1658 = vsyncadd (!%p1502_p4), %s1083_s5, 4294967168  ;;  %p14_p7 = scmp.ge.s32.totalorder %s1728_s18, 4   ;;  %s2114_s12 = smov %s1665_s13 }
 0x1a4   : > { %s2115_s13 = smov %s1669_s14  ;;  %s2116_s14 = smov %s1739_s21 }
 0x1a5   : > { %s2117_s15 = smov %s1728_s18  ;;  %16 = sbr.rel (!%p14_p7) target bundleno = 4 (0x4), region = 78 }
 0x1ac   :  { %1088 = vsyncpa [#allocation3], 1 }
 0x1ad   :  { %1090 = vsyncpa [#allocation3 + $0x1], 1 }
 0x1ae   :  { %1091 = vsyncpa [#allocation4], 1 }
 0x1af   :  { %1093 = vsyncpa [#allocation4 + $0x1], 1 }

// kernel: tpu_custom_call.1
= control target key start
LH: loop header
LB: loop body
LE: loop exit
PB: predicated region body
PF: predicated region fallthrough
CT: control target
= control target key end

     0   :  { %8 = vsyncpa [#allocation3], 0  ;;  %s2096_s0 = inlined_call_operand.vmem [shape: bf16[2,4,9,72], index: 0, kind: input, shape index: {}]   ;;  %s2097_s1 = inlined_call_operand.hbm [shape: bf16[2,3,72,128], index: 1, kind: input, shape index: {}]   ;;  %s2098_s2 = inlined_call_operand.vmem [shape: f32[1,128], index: 2, kind: input, shape index: {}]   ;;  %s2099_s3 = inlined_call_operand.hbm [shape: bf16[2,16,128], index: 3, kind: output, shape index: {}]  }
   0x1   :  { %9 = vsyncpa [#allocation4], 0 }
   0x2   :  { %11 = vsyncpa [#allocation4 + $0x1], 0  ;;  %s1703_s12 = smov 0   ;;  %s1705_s13 = smov 0  }
   0x3   :  { %s1707_s14 = smov 0   ;;  %s1709_s15 = smov 0  }
   0x4 LB: > { %s1724_s16 = sadd.s32 4294967295, %s1673_s15   ;;  %s1141_s17 = sadd.s32 4294967294, %s1673_s15   ;;  %s1673_s15 = sphi %s1709_s15, %s2117_s15   ;;  %s1669_s14 = sphi %s1707_s14, %s2116_s14   ;;  %s1665_s13 = sphi %s1705_s13, %s2115_s13   ;;  %s1661_s12 = sphi %s1703_s12, %s2114_s12  }
   0x5   : > { %s1728_s18 = sadd.s32 1, %s1673_s15   ;;  %s92_s19 = sadd.s32 1, %s1669_s14 }
   0x6   : > { %s89_s20 = ssub.s32 %s1673_s15, %s1728_s18  ;;  %p102_p0 = scmp.ne.s32.totalorder %s1669_s14, %s1665_s13 }
   0x7   : > { %p90_p1 = scmp.eq.s32.totalorder %s89_s20, 0  ;;  %p103_p2 = scmp.eq.s32.totalorder %s1724_s16, 1 }
   0x8   : > { %p108_p3 = scmp.ne.s32.totalorder %s1665_s13, %s1661_s12  ;;  %p109_p4 = scmp.eq.s32.totalorder %s1141_s17, 1 }
   0x9   : > { %s1739_s21 = scalar_select %p90_p1, %s1669_s14, %s92_s19  }
   0xa   : > { %p1741_p5 = por %p103_p2, %p102_p0  ;;  %p1745_p6 = por %p109_p4, %p108_p3 }
   0xb   : > { %p1142_p7 = scmp.ge.s32.totalorder %s1673_s15, 1  ;;  %p116_p8 = scmp.lt.s32.totalorder %s1673_s15, 3 }
   0xc   : > { %s2103_s22 = scalar_select %p1741_p5, 1, 0 }
   0xd   : > { %s2104_s23 = scalar_select %p1745_p6, 1, 0 }
   0xe   : > { %p2100_p9 = scmp.eq.s32.totalorder %s1724_s16, 0  ;;  %p1752_p10 = pnand %p1142_p7, %p116_p8 }
   0xf   : > { %s1675_s25 = smov [#allocation2]   ;;  %s1579_s30 = scalar_lea.hbm %s2097_s1, 3456 }
  0x10   : > { %s2105_s24 = scalar_select %p1752_p10, 1, 0 }
  0x11   : > { %s128_s26 = sshll.u32 %s1675_s25, 4  ;;  %p1497_p11 = pneg %p1752_p10  ;;  %s129_s26 = int_to_ptr.vmem [resolvable:$true] %s128_s26 }
  0x12   : > { %p1580_p13 = scmp.ne.s32.totalorder %s2097_s1, %s1579_s30  ;;  %p1586_p3 = scmp.lt.u32.totalorder %s1579_s30, %s2097_s1 }
  0x13   : > { %p1760_p12 = pnand %p2100_p9, %p1497_p11 }
  0x15   : > { %p1581_p0 = pneg %p1760_p12 }
  0x17   : > { %p1582_p1 = pnand %p1581_p0, %p1580_p13 }
  0x19   : > { %p1583_p2 = pneg %p1582_p1 }
  0x1b   : > { %p1588_p4 = pnand %p1586_p3, %p1583_p2 }
  0x1d   : > { %1591 = shalt.err (!%p1588_p4)
}
  0x1e   : > { %s1592_s8 = scalar_lea.vmem %s129_s26, 3456  ;;  %p1600_p9 = scmp.lt.s32.totalorder %s129_s26, %s129_s26 }
  0x1f   : > { %p1593_p7 = scmp.ne.s32.totalorder %s129_s26, %s1592_s8  ;;  %p1601_p6 = scmp.lt.s32.totalorder %s1592_s8, %s1592_s8 }
  0x21   : > { %p1595_p8 = pnand %p1593_p7, %p1581_p0  ;;  %p1602_p5 = por %p1601_p6, %p1600_p9 }
  0x23   : > { %p1596_p11 = pneg %p1595_p8 }
  0x25   : > { %p1603_p10 = pnand %p1602_p5, %p1596_p11 }
  0x27   : > { %1606 = shalt.err (!%p1603_p10)
}
  0x28   : > { %s1676_s9 = smov 64   ;;  %s1677_s10 = smov 4  }
  0x29   : > { %1500 = dma.hbm_to_vmem [thread:$0]  (!%p1760_p12), %s2097_s1, 3456, %s129_s26, [#allocation3], %s1676_s9, %s1676_s9, %s1677_s10  }
  0x2a   : > { %p2107_p13 = scmp.ne.s32.totalorder %s2105_s24, 0 }
  0x2b   : > { %p2108_p1 = scmp.eq.s32.totalorder (!%p2107_p13), %s1724_s16, 0 }
  0x2c   : > { %155 = sbr.rel (%p2107_p13) target bundleno = 413 (0x19d), region = 32 }
  0x33   : > { %1652 = dma.done.wait (%p2108_p1), [#allocation3], 3456   ;;  %p2109_p0 = pmov %p2108_p1 }
  0x34   : > { %v1678_v0 = vmov 0.0   ;;  %vm1679_vm0 = vmmov 0   ;;  %p179_p5 = scmp.lt.s32.totalorder %s1724_s16, 1  ;;  %v1793_v1 = vld [vmem:[#allocation2 + $0x24] sm:$0xff]   ;;  %v1795_v2 = vld [vmem:[#allocation2 + $0x90] sm:$0xff]   ;;  %v1803_v4 = vld [vmem:[#allocation2 + $0x98] sm:$0xff]  }
  0x35   : > { %1654 = vsyncadd (%p2109_p0), [#allocation3], 4294963840  ;;  %1291 = vmatprep.subr.bf16.mxu0 %v1678_v0  ;;  %1319 = vmatprep.subr.bf16.mxu1 %v1678_v0  ;;  %v1799_v3 = vld [vmem:[#allocation2 + $0x2c] sm:$0xff]   ;;  %v1807_v5 = vld [vmem:[#allocation2 + $0x34] sm:$0xff]   ;;  %vm255_vm1 = vcmask 1043456   ;;  %vm251_vm2 = vcmask 588800  }
  0x36   : > { %1301 = vmatprep.mubr.msk.bf16.mxu0 %vm1679_vm0, %v1678_v0  ;;  %1329 = vmatprep.mubr.msk.bf16.mxu1 %vm1679_vm0, %v1678_v0  ;;  %s180_s19 = scalar_select %p179_p5, %s1724_s16, 1  ;;  %v1811_v6 = vld [vmem:[#allocation2 + $0xa0] sm:$0xff]   ;;  %v1822_v8 = vld [vmem:[#allocation2 + $0xa8] sm:$0xff]   ;;  %v1556_v10 = vld [vmem:[#allocation2 + $0xb0] ss:$0 sps:$4 sm:$0xff]  }
  0x37   : > { %1292 = vmatpush3.bf16.msra.mxu0 %v1793_v1  ;;  %1320 = vmatpush3.bf16.msra.mxu1 %v1795_v2  ;;  %v1819_v7 = vld [vmem:[#allocation2 + $0x3c] sm:$0xff]   ;;  %v1555_v9 = vld [vmem:[#allocation2 + $0x44] ss:$0 sps:$4 sm:$0xff]   ;;  %v1835_v12 = vsel %vm255_vm1, %v1556_v10, 0  ;;  %v1845_v15 = vld [vmem:[#allocation2 + $0x6c] sm:$0xff]   ;;  %s176_s27 = sand.u32 1, %s1665_s13  }
  0x38   : > { %1293 = vmatprep.subr.bf16.mxu0 %v1678_v0  ;;  %1321 = vmatprep.subr.bf16.mxu1 %v1678_v0  ;;  %s1210_s20 = sshll.u32 %s180_s19, 5  ;;  %v1831_v11 = vsel %vm255_vm1, %v1555_v9, 0  ;;  %v1841_v14 = vld [vmem:[#allocation2] sm:$0xff]   ;;  %v1850_v16 = vld [vmem:[#allocation2 + $0x8] sm:$0xff]   ;;  %v1857_v17 = vld [vmem:[#allocation2 + $0x74] sm:$0xff]   ;;  %s1147_s28 = sshll.u32 %s176_s27, 3 }
  0x39   : > { %s1817_s26 = scalar_lea.vmem %s2096_s0, %s1210_s20  ;;  %v1865_v18 = vld [vmem:[#allocation2 + $0x10] sm:$0xff]   ;;  %v1869_v19 = vld [vmem:[#allocation2 + $0x7c] sm:$0xff]   ;;  %v1877_v21 = vld [vmem:[#allocation2 + $0x84] sm:$0xff]   ;;  %vm535_vm3 = vsmask.f32 3328  ;;  %s1213_s4 = sshll.u32 %s1724_s16, 7 }
  0x3a   : > { %v1838_v13 = vld [vmem:[%s1817_s26 + $0x10] ss:$8 sps:$4 sm:$0xff]   ;;  %v1566_v22 = vld [vmem:[#allocation2 + $0x20] ss:$0 sps:$4 sm:$0xff]   ;;  %v1567_v23 = vld [vmem:[#allocation2 + $0x8c] ss:$0 sps:$4 sm:$0xff]   ;;  %s2051_s9 = scalar_lea.hbm %s2099_s3, %s1213_s4 }
  0x3b   : > { %1294 = vmatpush3.bf16.msra.mxu0 %v1799_v3  ;;  %1322 = vmatpush3.bf16.msra.mxu1 %v1803_v4  ;;  %v1873_v20 = vld [vmem:[#allocation2 + $0x18] sm:$0xff]   ;;  %v1884_v24 = vsel %vm255_vm1, %v1566_v22, 0  ;;  %v531_v25 = vld [vmem:[%s1817_s26] sm:$0xf]  ;;  %v533_v26 = vld [vmem:[%s1817_s26 + $0x8] sm:$0xf] }
  0x3c   : > { %1295 = vmatprep.subr.bf16.mxu0 %v1678_v0  ;;  %1323 = vmatprep.subr.bf16.mxu1 %v1678_v0  ;;  %v1890_v27 = vsel %vm255_vm1, %v1567_v23, 0  ;;  %v1568_v28 = vld [vmem:[%s1817_s26] ss:$8 sps:$4 sm:$0xff]   ;;  %v539_v30 = vshrl.u32 %v531_v25, 16  ;;  %v542_v31 = vshll.u32 %v531_v25, 16  ;;  %v553_v32 = vshrl.u32 %v533_v26, 16 }
  0x3d   : > { %v1894_v29 = vld [vmem:[#allocation2 + $0x48] sm:$0xff]   ;;  %v556_v33 = vshll.u32 %v533_v26, 16  ;;  %v1898_v34 = vld [vmem:[#allocation2 + $0xb4] sm:$0xff]   ;;  %v1908_v40 = vld [vmem:[#allocation2 + $0xbc] sm:$0xff]   ;;  %vm536_vm4 = vsmask.f32 7440 }
  0x3e   : > { %v1904_v35 = vld [vmem:[#allocation2 + $0x50] sm:$0xff]   ;;  %v541_v36 = vrot.slane %v539_v30, 4  ;;  %v544_v37 = vrot.slane %v542_v31, 5  ;;  %v555_v38 = vrot.slane %v553_v32, 4  ;;  %v532_v41 = vld [vmem:[%s1817_s26 + $0x4] sm:$0x1]  ;;  %vm1932_vm5 = vmor %vm535_vm3, %vm536_vm4 }
  0x3f   : > { %1296 = vmatpush3.bf16.msra.mxu0 %v1807_v5  ;;  %1324 = vmatpush3.bf16.msra.mxu1 %v1811_v6  ;;  %v558_v39 = vrot.slane %v556_v33, 5  ;;  %v534_v42 = vld [vmem:[%s1817_s26 + $0xc] sm:$0x1]  ;;  %v1918_v43 = vld [vmem:[#allocation2 + $0x58] sm:$0xff]   ;;  %v548_v45 = vshll.u32 %v532_v41, 16  ;;  %v1922_v48 = vld [vmem:[#allocation2 + $0xc4] sm:$0xff]  }
  0x40   : > { %1297 = vmatprep.subr.bf16.mxu0 %v1678_v0  ;;  %1325 = vmatprep.subr.bf16.mxu1 %v1678_v0  ;;  %v545_v44 = vor.u32 %v544_v37, %v541_v36  ;;  %v562_v47 = vshll.u32 %v534_v42, 16  ;;  %v1926_v49 = vld [vmem:[#allocation2 + $0x60] sm:$0xff]   ;;  %v1930_v54 = vld [vmem:[#allocation2 + $0xcc] sm:$0xff]   ;;  %v1577_v55 = vld [vmem:[#allocation2 + $0x68] ss:$0 sps:$4 sm:$0xff]   ;;  %s178_s5 = scalar_lea.vmem [#allocation5], %s1147_s28 }
  0x41   : > { %v559_v46 = vor.u32 %v558_v39, %v555_v38  ;;  %v550_v51 = vrot.slane %v548_v45, 5  ;;  %v1578_v57 = vld [vmem:[#allocation2 + $0xd4] ss:$0 sps:$4 sm:$0xff]   ;;  %v1945_v60 = vsel %vm255_vm1, %v1577_v55, 0  ;;  %v1195_v63 = vld [vmem:[%s1817_s26 + $0x10] sm:$0xf] }
  0x42   : > { %v546_v50 = vrot.slane %v545_v44, 4  ;;  %v564_v53 = vrot.slane %v562_v47, 5  ;;  %v1949_v61 = vsel %vm255_vm1, %v1578_v57, 0  ;;  %v1196_v10 = vld [vmem:[%s1817_s26 + $0x14] sm:$0x1]  ;;  %s1067_s6 = sshll.u32 %s178_s5, 4  ;;  %s2053_s6 = int_to_ptr.vmem [resolvable:$true] %s1067_s6 }
  0x43   : > { %1298 = vmatpush3.bf16.msra.mxu0 %v1819_v7  ;;  %1326 = vmatpush3.bf16.msra.mxu1 %v1822_v8  ;;  %v560_v52 = vrot.slane %v559_v46, 4  ;;  %v1202_v38 = vld [vmem:[%s2098_s2] ss:$0 sm:$0xff]  ;;  %s2055_s10 = scalar_lea.sflag [#allocation4], %s176_s27  ;;  %s1607_s11 = scalar_lea.vmem %s2053_s6, 128 }
  0x44   : > { %1299 = vmatprep.subr.bf16.mxu0 %v1678_v0  ;;  %1327 = vmatprep.subr.bf16.mxu1 %v1678_v0  ;;  %v551_v58 = vsel %vm1932_vm5, %v546_v50, %v550_v51  ;;  %p1608_p6 = scmp.ne.s32.totalorder %s2053_s6, %s1607_s11  ;;  %p2112_p9 = scmp.ne.s32.totalorder %s2103_s22, 0 }
  0x45   : > { %v565_v59 = vsel %vm1932_vm5, %v560_v52, %v564_v53  ;;  %s1680_s16 = smov [#allocation5]  }
  0x46   : > { %v1178_v62 = vcombine.low %v551_v58, %v565_v59  ;;  %p1609_p10 = pnand %p1608_p6, %p2112_p9  ;;  %s1611_s17 = sshll.u32 %s1680_s16, 4  ;;  %s1612_s17 = int_to_ptr.vmem [resolvable:$false] %s1611_s17 }
  0x47   : > { %1300 = vmatpush3.bf16.msra.mxu0 %v1831_v11  ;;  %1328 = vmatpush3.bf16.msra.mxu1 %v1835_v12  ;;  %s1613_s19 = scalar_lea.vmem %s1612_s17, 256  ;;  %p1614_p2 = scmp.lt.s32.totalorder %s2053_s6, %s1612_s17 }
  0x48   : > { %1305 = vmatprep.subr.bf16.mxu0 %v1678_v0  ;;  %1333 = vmatprep.subr.bf16.mxu1 %v1678_v0  ;;  %p1610_p12 = pneg %p1609_p10  ;;  %p1615_p3 = scmp.lt.s32.totalorder %s1613_s19, %s1607_s11 }
  0x4a   : > { %1302 = vmatmul.mubr.msk.bf16.vlgmr.msra.gmra.mrb[0].mxu0 %vm251_vm2, %v1838_v13  ;;  %1330 = vmatmul.mubr.msk.bf16.vlgmr.msra.gmra.mrb[0].mxu1 %vm251_vm2, %v1838_v13  ;;  %p1616_p4 = por %p1615_p3, %p1614_p2 }
  0x4b   : > { %1306 = vmatpush3.bf16.msra.mxu0 %v1841_v14  ;;  %1334 = vmatpush3.bf16.msra.mxu1 %v1845_v15 }
  0x4c   : > { %1307 = vmatprep.subr.bf16.mxu0 %v1678_v0  ;;  %1335 = vmatprep.subr.bf16.mxu1 %v1678_v0  ;;  %p1617_p7 = pnand %p1616_p4, %p1610_p12 }
  0x4d   : > { %1315 = vmatprep.mubr.msk.bf16.mxu0 %vm1679_vm0, %v1678_v0  ;;  %1343 = vmatprep.mubr.msk.bf16.mxu1 %vm1679_vm0, %v1678_v0 }
  0x4f   : > { %1308 = vmatpush3.bf16.msra.mxu0 %v1850_v16  ;;  %1336 = vmatpush3.bf16.msra.mxu1 %v1857_v17 }
  0x50   : > { %1309 = vmatprep.subr.bf16.mxu0 %v1678_v0  ;;  %1337 = vmatprep.subr.bf16.mxu1 %v1678_v0 }
  0x53   : > { %1310 = vmatpush3.bf16.msra.mxu0 %v1865_v18  ;;  %1338 = vmatpush3.bf16.msra.mxu1 %v1869_v19 }
  0x54   : > { %1311 = vmatprep.subr.bf16.mxu0 %v1678_v0  ;;  %1339 = vmatprep.subr.bf16.mxu1 %v1678_v0 }
  0x57   : > { %1312 = vmatpush3.bf16.msra.mxu0 %v1873_v20  ;;  %1340 = vmatpush3.bf16.msra.mxu1 %v1877_v21 }
  0x58   : > { %1313 = vmatprep.subr.bf16.mxu0 %v1678_v0  ;;  %1341 = vmatprep.subr.bf16.mxu1 %v1678_v0 }
  0x5b   : > { %1314 = vmatpush3.bf16.msra.mxu0 %v1884_v24  ;;  %1342 = vmatpush3.bf16.msra.mxu1 %v1890_v27 }
  0x5c   : > { %1347 = vmatprep.subr.bf16.mxu0 %v1678_v0  ;;  %1361 = vmatprep.subr.bf16.mxu1 %v1678_v0 }
  0x5e   : > { %1316 = vmatmul.mubr.msk.bf16.vlgmr.msra.gmra.mrb[0].mxu0 %vm251_vm2, %v1568_v28  ;;  %1344 = vmatmul.mubr.msk.bf16.vlgmr.msra.gmra.mrb[0].mxu1 %vm251_vm2, %v1568_v28 }
  0x5f   : > { %1348 = vmatpush3.bf16.msra.mxu0 %v1894_v29  ;;  %1362 = vmatpush3.bf16.msra.mxu1 %v1898_v34 }
  0x60   : > { %1349 = vmatprep.subr.bf16.mxu0 %v1678_v0  ;;  %1363 = vmatprep.subr.bf16.mxu1 %v1678_v0 }
  0x61   : > { %1357 = vmatprep.mubr.msk.bf16.mxu0 %vm1679_vm0, %v1678_v0  ;;  %1371 = vmatprep.mubr.msk.bf16.mxu1 %vm1679_vm0, %v1678_v0 }
  0x63   : > { %1350 = vmatpush3.bf16.msra.mxu0 %v1904_v35  ;;  %1364 = vmatpush3.bf16.msra.mxu1 %v1908_v40 }
  0x64   : > { %1351 = vmatprep.subr.bf16.mxu0 %v1678_v0  ;;  %1365 = vmatprep.subr.bf16.mxu1 %v1678_v0 }
  0x67   : > { %1352 = vmatpush3.bf16.msra.mxu0 %v1918_v43  ;;  %1366 = vmatpush3.bf16.msra.mxu1 %v1922_v48 }
  0x68   : > { %1353 = vmatprep.subr.bf16.mxu0 %v1678_v0  ;;  %1367 = vmatprep.subr.bf16.mxu1 %v1678_v0 }
  0x6b   : > { %1354 = vmatpush3.bf16.msra.mxu0 %v1926_v49  ;;  %1368 = vmatpush3.bf16.msra.mxu1 %v1930_v54 }
  0x6c   : > { %1355 = vmatprep.subr.bf16.mxu0 %v1678_v0  ;;  %1369 = vmatprep.subr.bf16.mxu1 %v1678_v0 }
  0x6f   : > { %1356 = vmatpush3.bf16.msra.mxu0 %v1945_v60  ;;  %1370 = vmatpush3.bf16.msra.mxu1 %v1949_v61 }
  0x70   : > { %1375 = vmatprep.subr.bf16.mxu0 %v1678_v0  ;;  %1403 = vmatprep.subr.bf16.mxu1 %v1678_v0 }
  0x72   : > { %1358 = vmatmul.mubr.msk.bf16.vlgmr.msra.gmra.mrb[0].mxu0 %vm251_vm2, %v1178_v62  ;;  %1372 = vmatmul.mubr.msk.bf16.vlgmr.msra.gmra.mrb[0].mxu1 %vm251_vm2, %v1178_v62 }
  0x73   : > { %1376 = vmatpush3.bf16.msra.mxu0 %v1793_v1  ;;  %1404 = vmatpush3.bf16.msra.mxu1 %v1795_v2  ;;  %v1197_v1 = vld [vmem:[%s1817_s26 + $0x18] sm:$0xf]  ;;  %v907_v2 = vshrl.u32 %v1195_v63, 16 }
  0x74   : > { %1377 = vmatprep.subr.bf16.mxu0 %v1678_v0  ;;  %1405 = vmatprep.subr.bf16.mxu1 %v1678_v0 }
  0x75   : > { %1385 = vmatprep.mubr.msk.bf16.mxu0 %vm1679_vm0, %v1678_v0  ;;  %1413 = vmatprep.mubr.msk.bf16.mxu1 %vm1679_vm0, %v1678_v0 }
  0x77   : > { %1378 = vmatpush3.bf16.msra.mxu0 %v1799_v3  ;;  %1406 = vmatpush3.bf16.msra.mxu1 %v1803_v4  ;;  %v910_v3 = vshll.u32 %v1195_v63, 16  ;;  %v921_v4 = vshrl.u32 %v1197_v1, 16 }
  0x78   : > { %1379 = vmatprep.subr.bf16.mxu0 %v1678_v0  ;;  %1407 = vmatprep.subr.bf16.mxu1 %v1678_v0 }
  0x7b   : > { %1380 = vmatpush3.bf16.msra.mxu0 %v1807_v5  ;;  %1408 = vmatpush3.bf16.msra.mxu1 %v1811_v6  ;;  %v924_v5 = vshll.u32 %v1197_v1, 16  ;;  %v909_v6 = vrot.slane %v907_v2, 4 }
  0x7c   : > { %1381 = vmatprep.subr.bf16.mxu0 %v1678_v0  ;;  %1409 = vmatprep.subr.bf16.mxu1 %v1678_v0 }
  0x7d   : > { %v926_v9 = vrot.slane %v924_v5, 5 }
  0x7f   : > { %1382 = vmatpush3.bf16.msra.mxu0 %v1819_v7  ;;  %1410 = vmatpush3.bf16.msra.mxu1 %v1822_v8  ;;  %v912_v7 = vrot.slane %v910_v3, 5  ;;  %v923_v8 = vrot.slane %v921_v4, 4 }
  0x80   : > { %1383 = vmatprep.subr.bf16.mxu0 %v1678_v0  ;;  %1411 = vmatprep.subr.bf16.mxu1 %v1678_v0 }
  0x83   : > { %1384 = vmatpush3.bf16.msra.mxu0 %v1831_v11  ;;  %1412 = vmatpush3.bf16.msra.mxu1 %v1835_v12  ;;  %v1198_v11 = vld [vmem:[%s1817_s26 + $0x1c] sm:$0x1]  ;;  %v913_v12 = vor.u32 %v912_v7, %v909_v6 }
  0x84   : > { %1389 = vmatprep.subr.bf16.mxu0 %v1678_v0  ;;  %1417 = vmatprep.subr.bf16.mxu1 %v1678_v0 }
  0x86   : > { %1386 = vmatmul.mubr.msk.bf16.vlgmr.msra.gmra.mrb[4].mxu0 %vm251_vm2, %v1178_v62  ;;  %1414 = vmatmul.mubr.msk.bf16.vlgmr.msra.gmra.mrb[4].mxu1 %vm251_vm2, %v1178_v62 }
  0x87   : > { %1390 = vmatpush3.bf16.msra.mxu0 %v1841_v14  ;;  %1418 = vmatpush3.bf16.msra.mxu1 %v1845_v15  ;;  %v927_v14 = vor.u32 %v926_v9, %v923_v8  ;;  %v930_v15 = vshll.u32 %v1198_v11, 16 }
  0x88   : > { %1391 = vmatprep.subr.bf16.mxu0 %v1678_v0  ;;  %1419 = vmatprep.subr.bf16.mxu1 %v1678_v0 }
  0x89   : > { %1399 = vmatprep.mubr.msk.bf16.mxu0 %vm1679_vm0, %v1678_v0  ;;  %1427 = vmatprep.mubr.msk.bf16.mxu1 %vm1679_vm0, %v1678_v0 }
  0x8b   : > { %1392 = vmatpush3.bf16.msra.mxu0 %v1850_v16  ;;  %1420 = vmatpush3.bf16.msra.mxu1 %v1857_v17  ;;  %v914_v16 = vrot.slane %v913_v12, 4 }
  0x8c   : > { %1393 = vmatprep.subr.bf16.mxu0 %v1678_v0  ;;  %1421 = vmatprep.subr.bf16.mxu1 %v1678_v0 }
  0x8f   : > { %1394 = vmatpush3.bf16.msra.mxu0 %v1865_v18  ;;  %1422 = vmatpush3.bf16.msra.mxu1 %v1869_v19  ;;  %v928_v18 = vrot.slane %v927_v14, 4  ;;  %v932_v19 = vrot.slane %v930_v15, 5 }
  0x90   : > { %1395 = vmatprep.subr.bf16.mxu0 %v1678_v0  ;;  %1423 = vmatprep.subr.bf16.mxu1 %v1678_v0 }
  0x93   : > { %1396 = vmatpush3.bf16.msra.mxu0 %v1873_v20  ;;  %1424 = vmatpush3.bf16.msra.mxu1 %v1877_v21  ;;  %v933_v21 = vsel %vm1932_vm5, %v928_v18, %v932_v19 }
  0x94   : > { %1397 = vmatprep.subr.bf16.mxu0 %v1678_v0  ;;  %1425 = vmatprep.subr.bf16.mxu1 %v1678_v0 }
  0x97   : > { %1398 = vmatpush3.bf16.msra.mxu0 %v1884_v24  ;;  %1426 = vmatpush3.bf16.msra.mxu1 %v1890_v27 }
  0x98   : > { %1431 = vmatprep.subr.bf16.mxu0 %v1678_v0  ;;  %1445 = vmatprep.subr.bf16.mxu1 %v1678_v0 }
  0x9a   : > { %1400 = vmatmul.mubr.msk.bf16.vlgmr.msra.gmra.mrb[4].mxu0 %vm251_vm2, %v1838_v13  ;;  %1428 = vmatmul.mubr.msk.bf16.vlgmr.msra.gmra.mrb[4].mxu1 %vm251_vm2, %v1838_v13  ;;  %v916_v13 = vshll.u32 %v1196_v10, 16 }
  0x9b   : > { %1432 = vmatpush3.bf16.msra.mxu0 %v1894_v29  ;;  %1446 = vmatpush3.bf16.msra.mxu1 %v1898_v34 }
  0x9c   : > { %1433 = vmatprep.subr.bf16.mxu0 %v1678_v0  ;;  %1447 = vmatprep.subr.bf16.mxu1 %v1678_v0  ;;  %v918_v17 = vrot.slane %v916_v13, 5 }
  0x9d   : > { %1441 = vmatprep.mubr.msk.bf16.mxu0 %vm1679_vm0, %v1678_v0  ;;  %1455 = vmatprep.mubr.msk.bf16.mxu1 %vm1679_vm0, %v1678_v0 }
  0x9e   : > { %v919_v20 = vsel %vm1932_vm5, %v914_v16, %v918_v17 }
  0x9f   : > { %1434 = vmatpush3.bf16.msra.mxu0 %v1904_v35  ;;  %1448 = vmatpush3.bf16.msra.mxu1 %v1908_v40  ;;  %v1199_v22 = vcombine.low %v919_v20, %v933_v21 }
  0xa0   : > { %1435 = vmatprep.subr.bf16.mxu0 %v1678_v0  ;;  %1449 = vmatprep.subr.bf16.mxu1 %v1678_v0 }
  0xa3   : > { %1436 = vmatpush3.bf16.msra.mxu0 %v1918_v43  ;;  %1450 = vmatpush3.bf16.msra.mxu1 %v1922_v48 }
  0xa4   : > { %1437 = vmatprep.subr.bf16.mxu0 %v1678_v0  ;;  %1451 = vmatprep.subr.bf16.mxu1 %v1678_v0 }
  0xa7   : > { %1438 = vmatpush3.bf16.msra.mxu0 %v1926_v49  ;;  %1452 = vmatpush3.bf16.msra.mxu1 %v1930_v54 }
  0xa8   : > { %1439 = vmatprep.subr.bf16.mxu0 %v1678_v0  ;;  %1453 = vmatprep.subr.bf16.mxu1 %v1678_v0 }
  0xab   : > { %1440 = vmatpush3.bf16.msra.mxu0 %v1945_v60  ;;  %1454 = vmatpush3.bf16.msra.mxu1 %v1949_v61 }
  0xae   : > { %1442 = vmatmul.mubr.msk.bf16.vlgmr.msra.gmra.mrb[4].mxu0 %vm251_vm2, %v1199_v22  ;;  %1456 = vmatmul.mubr.msk.bf16.vlgmr.msra.gmra.mrb[4].mxu1 %vm251_vm2, %v1199_v22 }
 0x145   : > { %v646_v23 = vpop.f32.mrb[0].mxu0  ;;  %v729_v24 = vpop.f32.mrb[0].mxu1 }
 0x146   : > { %v1359_v25 = vpop.f32.mrb[1].mxu0  ;;  %v1026_v26 = vmax.f32 %v646_v23, %v729_v24  ;;  %v1373_v27 = vpop.f32.mrb[1].mxu1 }
 0x147   : > { %v649_v28 = vpop.f32.mrb[2].mxu0  ;;  %v732_v29 = vpop.f32.mrb[2].mxu1 }
 0x148   : > { %v1360_v30 = vpop.f32.mrb[3].mxu0  ;;  %v1027_v31 = vmax.f32 %v649_v28, %v732_v29  ;;  %v1374_v0 = vpop.f32.mrb[3].mxu1 }
 0x181   : > { %v974_v32 = vpop.f32.mrb[4].mxu0  ;;  %v1017_v33 = vpop.f32.mrb[4].mxu1 }
 0x182   : > { %v1443_v34 = vpop.f32.mrb[5].mxu0  ;;  %v1028_v35 = vmax.f32 %v974_v32, %v1017_v33  ;;  %v1457_v36 = vpop.f32.mrb[5].mxu1 }
 0x183   : > { %v977_v37 = vpop.f32.mrb[6].mxu0  ;;  %v1020_v39 = vpop.f32.mrb[6].mxu1 }
 0x184   : > { %v1444_v40 = vpop.f32.mrb[7].mxu0  ;;  %v1030_v41 = vmax.f32 %v1026_v26, %v1028_v35  ;;  %v1029_v42 = vmax.f32 %v977_v37, %v1020_v39  ;;  %v1458_v43 = vpop.f32.mrb[7].mxu1 }
 0x186   : > { %v1039_v44 = vadd.f32 %v1202_v38, %v1030_v41  ;;  %v1031_v45 = vmax.f32 %v1027_v31, %v1029_v42 }
 0x188   : > { %v1040_v46 = vadd.f32 %v1202_v38, %v1031_v45  ;;  %v1041_v47 = vmax.f32 %v1039_v44, 0.0 }
 0x18a   : > { %v1042_v48 = vmax.f32 %v1040_v46, 0.0 }
 0x18c   : > { %v1217_v49 = vpack.c.bf16 %v1042_v48, %v1041_v47 }
 0x18e   : > { %1218 = vst [vmem:[%s178_s5] sm:$0xff] %v1217_v49  }
 0x18f   : > { %1620 = shalt.err (!%p1617_p7)
}
 0x190   : > { %s1621_s20 = scalar_lea.hbm %s2051_s9, 128  ;;  %s1625_s26 = scalar_lea.hbm %s2099_s3, 256 }
 0x191   : > { %p1622_p8 = scmp.ne.s32.totalorder %s2051_s9, %s1621_s20  ;;  %p1626_p1 = scmp.lt.u32.totalorder %s2051_s9, %s2099_s3 }
 0x192   : > { %p1627_p0 = scmp.lt.u32.totalorder %s1625_s26, %s1621_s20  ;;  %p1629_p6 = scmp.lt.u32.totalorder %s1621_s20, %s2051_s9 }
 0x193   : > { %p1623_p11 = pnand %p1622_p8, %p2112_p9 }
 0x194   : > { %p1628_p5 = por %p1627_p0, %p1626_p1 }
 0x195   : > { %p1624_p13 = pneg %p1623_p11 }
 0x196   : > { %p1630_p10 = por %p1629_p6, %p1628_p5 }
 0x198   : > { %p1631_p12 = pnand %p1630_p10, %p1624_p13 }
 0x19a   : > { %1634 = shalt.err (!%p1631_p12)
}
 0x19b   : > { %s1681_s29 = smov 64   ;;  %s1682_s30 = smov 4  }
 0x19c   : > { %1495 = dma.vmem_to_hbm [thread:$0]  (%p2112_p9), %s2053_s6, 128, %s2051_s9, %s2055_s10, %s1681_s29, %s1681_s29, %s1682_s30  }
 0x19d PF: > { %p1507_p2 = scmp.ge.s32.totalorder %s1673_s15, 2  ;;  %s1082_s4 = sand.u32 1, %s1661_s12  }
 0x19e   : > { %p2113_p3 = scmp.ne.s32.totalorder %s2104_s23, 0  ;;  %s1083_s5 = scalar_lea.sflag [#allocation4], %s1082_s4 }
 0x1a0   : > { %p1502_p4 = pnand %p1507_p2, %p2113_p3 }
 0x1a2   : > { %1656 = dma.done.wait (!%p1502_p4), %s1083_s5, 128  }
 0x1a3   : > { %1658 = vsyncadd (!%p1502_p4), %s1083_s5, 4294967168  ;;  %p14_p7 = scmp.ge.s32.totalorder %s1728_s18, 4   ;;  %s2114_s12 = smov %s1665_s13 }
 0x1a4   : > { %s2115_s13 = smov %s1669_s14  ;;  %s2116_s14 = smov %s1739_s21 }
 0x1a5   : > { %s2117_s15 = smov %s1728_s18  ;;  %16 = sbr.rel (!%p14_p7) target bundleno = 4 (0x4), region = 78 }
 0x1ac   :  { %1088 = vsyncpa [#allocation3], 1 }
 0x1ad   :  { %1090 = vsyncpa [#allocation3 + $0x1], 1 }
 0x1ae   :  { %1091 = vsyncpa [#allocation4], 1 }
 0x1af   :  { %1093 = vsyncpa [#allocation4 + $0x1], 1 }

</bundles_post_ra>
